<compile_context>
chip_gen: v5e
topology: v5e:2x2
jax: 0.10.0
libtpu: 0.0.40
codegen_flags: <defaults>
</compile_context>

<pallas_src>
import math

import jax
import jax.numpy as jnp
from jax.experimental import pallas as pl
from jax.experimental.pallas import tpu as pltpu


# ---------------------------------------------------------------------------
# Fused kernel factory
# ---------------------------------------------------------------------------
def _make_block_kernel(B, Cin, Cout, T, K, G, has_res, has_ctrl,
                       max_mxu_depth=128, eps=1e-5):
    pad = K // 2
    BT = B * T
    cg = Cout // G
    inv_n = 1.0 / float(cg * T)
    f32, bf16 = jnp.float32, jnp.bfloat16

    # Tap chunking so each fused contraction depth stays <= max_mxu_depth
    # (128 keeps v5e single-pass; harmless extra push on v6e/v7x).
    def _chunks(c_in):
        per = max(1, max_mxu_depth // c_in)
        return [(k0, min(k0 + per, K)) for k0 in range(0, K, per)]

    chunks0 = _chunks(Cin)
    chunks1 = _chunks(Cout)

    def mish(v):
        # x * tanh(softplus(x)) == x * (n-1)/(n+1),  n = (1+exp(x))^2.
        # Clamp keeps exp finite; for x>20 the ratio is 1 to f32 precision.
        e = jnp.exp(jnp.minimum(v, 20.0))
        n = (1.0 + e) * (1.0 + e)
        return v * (n - 1.0) * pl.reciprocal(n + 1.0, approx=True)

    def make_taps(y):
        # y: (C, BT) f32 -> list of K shifted-and-masked taps (C, BT).
        # tap_k[:, b*T + t] = y[:, b*T + t + (k-pad)] if in-range else 0.
        tpos = jax.lax.broadcasted_iota(jnp.int32, (1, BT), 1) % T
        taps = []
        for k in range(K):
            s = k - pad
            shifted = y if s == 0 else pltpu.roll(y, shift=(-s) % BT, axis=1)
            valid = jnp.logical_and(tpos + s >= 0, tpos + s < T)
            taps.append(jnp.where(valid, shifted, 0.0))
        return taps

    def conv(taps, w_ref, b_col, chunks, c_in):
        # One fused-tap matmul per chunk; accumulator starts at chunk0 + bias.
        acc = None
        for (k0, k1) in chunks:
            op = jnp.concatenate(taps[k0:k1], axis=0).astype(bf16)   # (nk*C, BT)
            part = jnp.dot(w_ref[:, k0 * c_in:k1 * c_in], op,
                           preferred_element_type=f32)
            acc = (part + b_col) if acc is None else acc + part
        return acc

    def gn_mish(y, grp, seg, segT, gamma, beta):
        # y: (Cout, BT).  Per-(item) segment sums first (lane work T-x smaller
        # than a (Cout,Cout)x(Cout,BT) matmul), then the tiny group matmul.
        colsum = jnp.dot(y, seg, preferred_element_type=f32)        # (Cout, B)
        colsum2 = jnp.dot(y * y, seg, preferred_element_type=f32)   # (Cout, B)
        mu = jnp.dot(grp, colsum, preferred_element_type=f32) * inv_n
        ex2 = jnp.dot(grp, colsum2, preferred_element_type=f32) * inv_n
        rstd = jax.lax.rsqrt(ex2 - mu * mu + eps)                    # (Cout, B)
        a = gamma * rstd                                             # (Cout, B)
        b = beta - mu * a                                            # (Cout, B)
        a_full = jnp.dot(a, segT, preferred_element_type=f32)        # (Cout, BT)
        b_full = jnp.dot(b, segT, preferred_element_type=f32)        # (Cout, BT)
        return mish(a_full * y + b_full)

    def kernel(*refs):
        it = iter(refs)
        x_ref = next(it)                           # (Cin, BT)  f32
        condT_ref = next(it)                       # (cond_dim, B) f32
        if has_ctrl:
            cg_ref, cb_ref = next(it), next(it)    # (Cout, B) each
        w0_ref, b0_ref, g0_ref, be0_ref = next(it), next(it), next(it), next(it)
        w1_ref, b1_ref, g1_ref, be1_ref = next(it), next(it), next(it), next(it)
        wc_ref, bc_ref = next(it), next(it)        # (2Cout, cond_dim) bf16, (2Cout,1)
        if has_res:
            wr_ref, br_ref = next(it), next(it)    # (Cout, Cin) bf16, (Cout,1)
        grp_ref, seg_ref, segT_ref = next(it), next(it), next(it)
        o_ref = next(it)                           # (Cout, BT)

        x = x_ref[...]
        grp = grp_ref[...]
        seg = seg_ref[...]
        segT = segT_ref[...]

        # ---- Conv1dBlock 0: fused-tap conv -> GroupNorm -> Mish (whole batch)
        h = conv(make_taps(x), w0_ref, b0_ref[...], chunks0, Cin)
        h = gn_mish(h, grp, seg, segT, g0_ref[...], be0_ref[...])

        # ---- FiLM from cond encoder (Mish -> Linear), control FiLM folded in
        embT = jnp.dot(wc_ref[...], mish(condT_ref[...]).astype(bf16),
                       preferred_element_type=f32) + bc_ref[...]     # (2Cout, B)
        scale = embT[:Cout, :]
        bias = embT[Cout:, :]
        if has_ctrl:
            gc = cg_ref[...]
            scale = gc * scale
            bias = gc * bias + cb_ref[...]
        h = (jnp.dot(scale, segT, preferred_element_type=f32) * h
             + jnp.dot(bias, segT, preferred_element_type=f32))

        # ---- Conv1dBlock 1
        h2 = conv(make_taps(h), w1_ref, b1_ref[...], chunks1, Cout)
        h2 = gn_mish(h2, grp, seg, segT, g1_ref[...], be1_ref[...])

        # ---- residual (1x1 conv over the whole slab, or identity) + add
        if has_res:
            res = jnp.dot(wr_ref[...], x.astype(bf16),
                          preferred_element_type=f32) + br_ref[...]
        else:
            res = x
        o_ref[...] = h2 + res                      # single lane-dense store

    return kernel


# ---------------------------------------------------------------------------
# Parameter handling (PyTorch layouts -> kernel layouts, done once)
# ---------------------------------------------------------------------------
def init_block_params(key, cin, cout, cond_dim, kernel_size):
    ks = jax.random.split(key, 12)

    def w(k, shape, fan_in):
        return jax.random.normal(k, shape, jnp.float32) / math.sqrt(fan_in)

    p = {
        'w0': w(ks[0], (cout, cin, kernel_size), cin * kernel_size),
        'b0': 0.05 * jax.random.normal(ks[1], (cout,), jnp.float32),
        'gn0_w': 1.0 + 0.05 * jax.random.normal(ks[2], (cout,), jnp.float32),
        'gn0_b': 0.05 * jax.random.normal(ks[3], (cout,), jnp.float32),
        'w1': w(ks[4], (cout, cout, kernel_size), cout * kernel_size),
        'b1': 0.05 * jax.random.normal(ks[5], (cout,), jnp.float32),
        'gn1_w': 1.0 + 0.05 * jax.random.normal(ks[6], (cout,), jnp.float32),
        'gn1_b': 0.05 * jax.random.normal(ks[7], (cout,), jnp.float32),
        'cond_w': w(ks[8], (2 * cout, cond_dim), cond_dim),    # nn.Linear layout
        'cond_b': 0.05 * jax.random.normal(ks[9], (2 * cout,), jnp.float32),
        'res_w': None, 'res_b': None,
    }
    if cin != cout:
        p['res_w'] = w(ks[10], (cout, cin, 1), cin)
        p['res_b'] = 0.05 * jax.random.normal(ks[11], (cout,), jnp.float32)
    return p


def pack_block_params(p, n_groups=8):
    cout, cin, K = p['w0'].shape
    f32, bf16 = jnp.float32, jnp.bfloat16
    col = lambda v: jnp.asarray(v, f32).reshape(-1, 1)
    # (Cout, Cin, K) -> fused (Cout, K*Cin), tap-major lanes, bf16 (f32 accum in kernel)
    fuse = lambda w: (jnp.asarray(w, f32).transpose(0, 2, 1)
                      .reshape(w.shape[0], -1).astype(bf16))
    gid = jnp.arange(cout) // (cout // n_groups)
    packed = {
        'dims': (cin, cout, K, n_groups),
        'has_res': p['res_w'] is not None,
        'w0': fuse(p['w0']),
        'b0': col(p['b0']), 'g0': col(p['gn0_w']), 'be0': col(p['gn0_b']),
        'w1': fuse(p['w1']),
        'b1': col(p['b1']), 'g1': col(p['gn1_w']), 'be1': col(p['gn1_b']),
        'wc': jnp.asarray(p['cond_w'], bf16), 'bc': col(p['cond_b']),
        'grp': (gid[:, None] == gid[None, :]).astype(f32),          # (Cout, Cout)
    }
    if packed['has_res']:
        packed['wr'] = jnp.asarray(p['res_w'], f32).reshape(cout, cin).astype(bf16)
        packed['br'] = col(p['res_b'])
    return packed


# ---------------------------------------------------------------------------
# Fused forward (single pallas_call, no grid: whole block fits in VMEM)
# ---------------------------------------------------------------------------
def cond_res_block_pallas(packed, x, cond, control_cond=None, max_mxu_depth=128):
    cin, cout, K, G = packed['dims']
    has_res = packed['has_res']
    has_ctrl = control_cond is not None
    B, Cin, T = x.shape
    assert Cin == cin
    BT = B * T
    f32 = jnp.float32

    # Fold batch into the lane axis: (B, C, T) -> (C, B*T)
    x_slab = jnp.asarray(x, f32).transpose(1, 0, 2).reshape(cin, BT)
    condT = jnp.asarray(cond, f32).T

    # Per-item lane-segment indicators for batch-folded GroupNorm / FiLM broadcasts
    item = jnp.arange(BT, dtype=jnp.int32) // T
    seg = (item[:, None] == jnp.arange(B)[None, :]).astype(f32)     # (BT, B)
    segT = seg.T                                                    # (B, BT)

    args = [x_slab, condT]
    if has_ctrl:
        gma, bta = control_cond
        args += [jnp.asarray(gma, f32).reshape(B, cout).T,
                 jnp.asarray(bta, f32).reshape(B, cout).T]
    args += [packed['w0'], packed['b0'], packed['g0'], packed['be0'],
             packed['w1'], packed['b1'], packed['g1'], packed['be1'],
             packed['wc'], packed['bc']]
    if has_res:
        args += [packed['wr'], packed['br']]
    args += [packed['grp'], seg, segT]

    kernel = _make_block_kernel(B, cin, cout, T, K, G, has_res, has_ctrl,
                                max_mxu_depth=max_mxu_depth)
    out_slab = pl.pallas_call(
        kernel,
        out_shape=jax.ShapeDtypeStruct((cout, BT), f32),
        compiler_params=pltpu.CompilerParams(
            vmem_limit_bytes=48 * 1024 * 1024),   # explicit, with headroom on v7x
    )(*args)
    # lane-dense (Cout, B*T) slab -> (B, Cout, T) in the wrapper
    return out_slab.reshape(cout, B, T).transpose(1, 0, 2)


# ---------------------------------------------------------------------------
# Plain-JAX reference (mirrors the PyTorch module) for correctness checking
# ---------------------------------------------------------------------------
def ref_forward(p, x, cond, control_cond, n_groups=8, eps=1e-5):
    hi = jax.lax.Precision.HIGHEST

    def conv1d(v, w, b, padding):
        y = jax.lax.conv_general_dilated(
            v, w, window_strides=(1,), padding=[(padding, padding)],
            dimension_numbers=('NCH', 'OIH', 'NCH'), precision=hi)
        return y + b[None, :, None]

    def gn(v, gamma, beta):
        B, C, T = v.shape
        vg = v.reshape(B, n_groups, (C // n_groups) * T)
        mu = jnp.mean(vg, axis=-1, keepdims=True)
        var = jnp.mean((vg - mu) ** 2, axis=-1, keepdims=True)
        vn = ((vg - mu) * jax.lax.rsqrt(var + eps)).reshape(B, C, T)
        return vn * gamma[None, :, None] + beta[None, :, None]

    mish = lambda v: v * jnp.tanh(jax.nn.softplus(v))

    Cout, _, K = p['w0'].shape
    h = mish(gn(conv1d(x, p['w0'], p['b0'], K // 2), p['gn0_w'], p['gn0_b']))
    embed = jnp.dot(mish(cond), p['cond_w'].T, precision=hi) + p['cond_b']
    scale = embed[:, :Cout][:, :, None]
    bias = embed[:, Cout:][:, :, None]
    h = scale * h + bias
    if control_cond is not None:
        gma, bta = control_cond
        h = gma * h + bta
    h = mish(gn(conv1d(h, p['w1'], p['b1'], K // 2), p['gn1_w'], p['gn1_b']))
    res = conv1d(x, p['res_w'], p['res_b'], 0) if p['res_w'] is not None else x
    return h + res


# ---------------------------------------------------------------------------
if __name__ == "__main__":
    key = jax.random.PRNGKey(0)
    kp, kp2, kx, kx2, kc, kg, kb = jax.random.split(key, 7)

    B, Cin, Cout, T, K, G, COND = 2, 16, 32, 16, 5, 8, 32
    TOL = 5e-2   # bf16 matmul operands (f32 accumulation) vs f32-HIGHEST reference

    params = init_block_params(kp, Cin, Cout, COND, K)
    packed = pack_block_params(params, G)

    x = jax.random.normal(kx, (B, Cin, T), jnp.float32)
    cond = jax.random.normal(kc, (B, COND), jnp.float32)
    gamma_ctrl = 1.0 + 0.1 * jax.random.normal(kg, (B, Cout, 1), jnp.float32)
    beta_ctrl = 0.1 * jax.random.normal(kb, (B, Cout, 1), jnp.float32)

    # 1) with control_cond and a 1x1 residual conv (in_channels != out_channels)
    fwd_ctrl = jax.jit(lambda a, c, g, b: cond_res_block_pallas(packed, a, c, (g, b)))
    out = fwd_ctrl(x, cond, gamma_ctrl, beta_ctrl)
    jax.block_until_ready(out)
    ref = ref_forward(params, x, cond, (gamma_ctrl, beta_ctrl), G)
    assert out.shape == (B, Cout, T), out.shape
    assert bool(jnp.all(jnp.isfinite(out)))
    assert float(jnp.max(jnp.abs(out - ref))) < TOL

    # 2) without control_cond
    fwd_plain = jax.jit(lambda a, c: cond_res_block_pallas(packed, a, c, None))
    out2 = fwd_plain(x, cond)
    jax.block_until_ready(out2)
    ref2 = ref_forward(params, x, cond, None, G)
    assert float(jnp.max(jnp.abs(out2 - ref2))) < TOL

    # 3) identity residual path (in_channels == out_channels)
    params_id = init_block_params(kp2, Cout, Cout, COND, K)
    packed_id = pack_block_params(params_id, G)
    x_id = jax.random.normal(kx2, (B, Cout, T), jnp.float32)
    out3 = jax.jit(lambda a, c: cond_res_block_pallas(packed_id, a, c, None))(x_id, cond)
    jax.block_until_ready(out3)
    ref3 = ref_forward(params_id, x_id, cond, None, G)
    assert float(jnp.max(jnp.abs(out3 - ref3))) < TOL

    print("KERNEL_OK")
</pallas_src>

<mosaic_0001>
module attributes {stable_mosaic.version = 11 : i64} {
  func.func @kernel(%arg0: memref<16x32xf32, #tpu.memory_space<vmem>>, %arg1: memref<32x2xf32, #tpu.memory_space<vmem>>, %arg2: memref<32x2xf32, #tpu.memory_space<vmem>>, %arg3: memref<32x2xf32, #tpu.memory_space<vmem>>, %arg4: memref<32x80xbf16, #tpu.memory_space<vmem>>, %arg5: memref<32x1xf32, #tpu.memory_space<vmem>>, %arg6: memref<32x1xf32, #tpu.memory_space<vmem>>, %arg7: memref<32x1xf32, #tpu.memory_space<vmem>>, %arg8: memref<32x160xbf16, #tpu.memory_space<vmem>>, %arg9: memref<32x1xf32, #tpu.memory_space<vmem>>, %arg10: memref<32x1xf32, #tpu.memory_space<vmem>>, %arg11: memref<32x1xf32, #tpu.memory_space<vmem>>, %arg12: memref<64x32xbf16, #tpu.memory_space<vmem>>, %arg13: memref<64x1xf32, #tpu.memory_space<vmem>>, %arg14: memref<32x16xbf16, #tpu.memory_space<vmem>>, %arg15: memref<32x1xf32, #tpu.memory_space<vmem>>, %arg16: memref<32x32xf32, #tpu.memory_space<vmem>>, %arg17: memref<32x2xf32, #tpu.memory_space<vmem>>, %arg18: memref<2x32xf32, #tpu.memory_space<vmem>>, %arg19: memref<32x32xf32, #tpu.memory_space<vmem>>) attributes {dimension_semantics = [], scalar_prefetch = 0 : i64, scratch_operands = 0 : i64, tpu.core_type = #tpu.core_type<tc>} {
    %c0 = arith.constant 0 : index
    %c0_0 = arith.constant 0 : index
    %0 = vector.load %arg0[%c0, %c0_0] : memref<16x32xf32, #tpu.memory_space<vmem>>, vector<16x32xf32>
    %c0_1 = arith.constant 0 : index
    %c0_2 = arith.constant 0 : index
    %1 = vector.load %arg16[%c0_1, %c0_2] : memref<32x32xf32, #tpu.memory_space<vmem>>, vector<32x32xf32>
    %c0_3 = arith.constant 0 : index
    %c0_4 = arith.constant 0 : index
    %2 = vector.load %arg17[%c0_3, %c0_4] : memref<32x2xf32, #tpu.memory_space<vmem>>, vector<32x2xf32>
    %c0_5 = arith.constant 0 : index
    %c0_6 = arith.constant 0 : index
    %3 = vector.load %arg18[%c0_5, %c0_6] : memref<2x32xf32, #tpu.memory_space<vmem>>, vector<2x32xf32>
    %4 = tpu.iota {dimensions = array<i32: 1>} : vector<1x32xi32>
    %c16_i32 = arith.constant 16 : i32
    %c0_i32 = arith.constant 0 : i32
    %5 = arith.cmpi eq, %c16_i32, %c0_i32 : i32
    %c1_i32 = arith.constant 1 : i32
    %6 = arith.select %5, %c1_i32, %c16_i32 : i32
    %7 = vector.broadcast %6 : i32 to vector<1x32xi32>
    %8 = arith.remsi %4, %7 : vector<1x32xi32>
    %c0_i32_7 = arith.constant 0 : i32
    %9 = vector.broadcast %c0_i32_7 : i32 to vector<1x32xi32>
    %10 = arith.cmpi ne, %8, %9 : vector<1x32xi32>
    %c0_i32_8 = arith.constant 0 : i32
    %11 = vector.broadcast %c0_i32_8 : i32 to vector<1x32xi32>
    %12 = arith.cmpi slt, %8, %11 : vector<1x32xi32>
    %c0_i32_9 = arith.constant 0 : i32
    %13 = arith.cmpi slt, %6, %c0_i32_9 : i32
    %14 = vector.broadcast %13 : i1 to vector<1x32xi1>
    %15 = vector.broadcast %14 : vector<1x32xi1> to vector<1x32xi1>
    %16 = arith.xori %12, %15 : vector<1x32xi1>
    %17 = arith.andi %16, %10 : vector<1x32xi1>
    %18 = vector.broadcast %6 : i32 to vector<1x32xi32>
    %19 = arith.addi %8, %18 : vector<1x32xi32>
    %20 = arith.select %17, %19, %8 : vector<1x32xi1>, vector<1x32xi32>
    %c2_i32 = arith.constant 2 : i32
    %21 = tpu.dynamic_rotate %0 by %c2_i32 dim 1 : vector<16x32xf32>, i32 -> vector<16x32xf32>
    %c-2_i32 = arith.constant -2 : i32
    %22 = vector.broadcast %c-2_i32 : i32 to vector<1x32xi32>
    %23 = arith.addi %20, %22 : vector<1x32xi32>
    %c0_i32_10 = arith.constant 0 : i32
    %24 = vector.broadcast %c0_i32_10 : i32 to vector<1x32xi32>
    %25 = arith.cmpi sge, %23, %24 : vector<1x32xi32>
    %c-2_i32_11 = arith.constant -2 : i32
    %26 = vector.broadcast %c-2_i32_11 : i32 to vector<1x32xi32>
    %27 = arith.addi %20, %26 : vector<1x32xi32>
    %c16_i32_12 = arith.constant 16 : i32
    %28 = vector.broadcast %c16_i32_12 : i32 to vector<1x32xi32>
    %29 = arith.cmpi slt, %27, %28 : vector<1x32xi32>
    %30 = arith.andi %25, %29 : vector<1x32xi1>
    %cst = arith.constant 0.000000e+00 : f32
    %31 = vector.shape_cast %30 : vector<1x32xi1> to vector<1x32xi1>
    %32 = vector.broadcast %31 : vector<1x32xi1> to vector<16x32xi1>
    %33 = vector.broadcast %cst : f32 to vector<16x32xf32>
    %34 = arith.select %32, %21, %33 : vector<16x32xi1>, vector<16x32xf32>
    %c1_i32_13 = arith.constant 1 : i32
    %35 = tpu.dynamic_rotate %0 by %c1_i32_13 dim 1 : vector<16x32xf32>, i32 -> vector<16x32xf32>
    %c-1_i32 = arith.constant -1 : i32
    %36 = vector.broadcast %c-1_i32 : i32 to vector<1x32xi32>
    %37 = arith.addi %20, %36 : vector<1x32xi32>
    %c0_i32_14 = arith.constant 0 : i32
    %38 = vector.broadcast %c0_i32_14 : i32 to vector<1x32xi32>
    %39 = arith.cmpi sge, %37, %38 : vector<1x32xi32>
    %c-1_i32_15 = arith.constant -1 : i32
    %40 = vector.broadcast %c-1_i32_15 : i32 to vector<1x32xi32>
    %41 = arith.addi %20, %40 : vector<1x32xi32>
    %c16_i32_16 = arith.constant 16 : i32
    %42 = vector.broadcast %c16_i32_16 : i32 to vector<1x32xi32>
    %43 = arith.cmpi slt, %41, %42 : vector<1x32xi32>
    %44 = arith.andi %39, %43 : vector<1x32xi1>
    %cst_17 = arith.constant 0.000000e+00 : f32
    %45 = vector.shape_cast %44 : vector<1x32xi1> to vector<1x32xi1>
    %46 = vector.broadcast %45 : vector<1x32xi1> to vector<16x32xi1>
    %47 = vector.broadcast %cst_17 : f32 to vector<16x32xf32>
    %48 = arith.select %46, %35, %47 : vector<16x32xi1>, vector<16x32xf32>
    %c0_i32_18 = arith.constant 0 : i32
    %49 = vector.broadcast %c0_i32_18 : i32 to vector<1x32xi32>
    %50 = arith.addi %20, %49 : vector<1x32xi32>
    %c0_i32_19 = arith.constant 0 : i32
    %51 = vector.broadcast %c0_i32_19 : i32 to vector<1x32xi32>
    %52 = arith.cmpi sge, %50, %51 : vector<1x32xi32>
    %c0_i32_20 = arith.constant 0 : i32
    %53 = vector.broadcast %c0_i32_20 : i32 to vector<1x32xi32>
    %54 = arith.addi %20, %53 : vector<1x32xi32>
    %c16_i32_21 = arith.constant 16 : i32
    %55 = vector.broadcast %c16_i32_21 : i32 to vector<1x32xi32>
    %56 = arith.cmpi slt, %54, %55 : vector<1x32xi32>
    %57 = arith.andi %52, %56 : vector<1x32xi1>
    %cst_22 = arith.constant 0.000000e+00 : f32
    %58 = vector.shape_cast %57 : vector<1x32xi1> to vector<1x32xi1>
    %59 = vector.broadcast %58 : vector<1x32xi1> to vector<16x32xi1>
    %60 = vector.broadcast %cst_22 : f32 to vector<16x32xf32>
    %61 = arith.select %59, %0, %60 : vector<16x32xi1>, vector<16x32xf32>
    %c31_i32 = arith.constant 31 : i32
    %62 = tpu.dynamic_rotate %0 by %c31_i32 dim 1 : vector<16x32xf32>, i32 -> vector<16x32xf32>
    %c1_i32_23 = arith.constant 1 : i32
    %63 = vector.broadcast %c1_i32_23 : i32 to vector<1x32xi32>
    %64 = arith.addi %20, %63 : vector<1x32xi32>
    %c0_i32_24 = arith.constant 0 : i32
    %65 = vector.broadcast %c0_i32_24 : i32 to vector<1x32xi32>
    %66 = arith.cmpi sge, %64, %65 : vector<1x32xi32>
    %c1_i32_25 = arith.constant 1 : i32
    %67 = vector.broadcast %c1_i32_25 : i32 to vector<1x32xi32>
    %68 = arith.addi %20, %67 : vector<1x32xi32>
    %c16_i32_26 = arith.constant 16 : i32
    %69 = vector.broadcast %c16_i32_26 : i32 to vector<1x32xi32>
    %70 = arith.cmpi slt, %68, %69 : vector<1x32xi32>
    %71 = arith.andi %66, %70 : vector<1x32xi1>
    %cst_27 = arith.constant 0.000000e+00 : f32
    %72 = vector.shape_cast %71 : vector<1x32xi1> to vector<1x32xi1>
    %73 = vector.broadcast %72 : vector<1x32xi1> to vector<16x32xi1>
    %74 = vector.broadcast %cst_27 : f32 to vector<16x32xf32>
    %75 = arith.select %73, %62, %74 : vector<16x32xi1>, vector<16x32xf32>
    %c30_i32 = arith.constant 30 : i32
    %76 = tpu.dynamic_rotate %0 by %c30_i32 dim 1 : vector<16x32xf32>, i32 -> vector<16x32xf32>
    %c2_i32_28 = arith.constant 2 : i32
    %77 = vector.broadcast %c2_i32_28 : i32 to vector<1x32xi32>
    %78 = arith.addi %20, %77 : vector<1x32xi32>
    %c0_i32_29 = arith.constant 0 : i32
    %79 = vector.broadcast %c0_i32_29 : i32 to vector<1x32xi32>
    %80 = arith.cmpi sge, %78, %79 : vector<1x32xi32>
    %c2_i32_30 = arith.constant 2 : i32
    %81 = vector.broadcast %c2_i32_30 : i32 to vector<1x32xi32>
    %82 = arith.addi %20, %81 : vector<1x32xi32>
    %c16_i32_31 = arith.constant 16 : i32
    %83 = vector.broadcast %c16_i32_31 : i32 to vector<1x32xi32>
    %84 = arith.cmpi slt, %82, %83 : vector<1x32xi32>
    %85 = arith.andi %80, %84 : vector<1x32xi1>
    %cst_32 = arith.constant 0.000000e+00 : f32
    %86 = vector.shape_cast %85 : vector<1x32xi1> to vector<1x32xi1>
    %87 = vector.broadcast %86 : vector<1x32xi1> to vector<16x32xi1>
    %88 = vector.broadcast %cst_32 : f32 to vector<16x32xf32>
    %89 = arith.select %87, %76, %88 : vector<16x32xi1>, vector<16x32xf32>
    %c0_33 = arith.constant 0 : index
    %c0_34 = arith.constant 0 : index
    %90 = vector.load %arg5[%c0_33, %c0_34] : memref<32x1xf32, #tpu.memory_space<vmem>>, vector<32x1xf32>
    %91 = tpu.concatenate %34, %48, %61, %75, %89 in 0 : vector<16x32xf32>, vector<16x32xf32>, vector<16x32xf32>, vector<16x32xf32>, vector<16x32xf32> -> vector<80x32xf32>
    %92 = arith.truncf %91 : vector<80x32xf32> to vector<80x32xbf16>
    %c0_35 = arith.constant 0 : index
    %c0_36 = arith.constant 0 : index
    %93 = vector.load %arg4[%c0_35, %c0_36] : memref<32x80xbf16, #tpu.memory_space<vmem>>, vector<32x80xbf16>
    %cst_37 = arith.constant dense<0.000000e+00> : vector<32x32xf32>
    %94 = tpu.matmul %93, %92, %cst_37 {dimension_numbers = #tpu.dot_dimension_numbers<[1], [0], [0], [1], [0, 0, 1, 1], [], []>} : vector<32x80xbf16>, vector<80x32xbf16>, vector<32x32xf32> -> vector<32x32xf32>
    %95 = vector.broadcast %90 : vector<32x1xf32> to vector<32x32xf32>
    %96 = arith.addf %94, %95 : vector<32x32xf32>
    %c0_38 = arith.constant 0 : index
    %c0_39 = arith.constant 0 : index
    %97 = vector.load %arg6[%c0_38, %c0_39] : memref<32x1xf32, #tpu.memory_space<vmem>>, vector<32x1xf32>
    %c0_40 = arith.constant 0 : index
    %c0_41 = arith.constant 0 : index
    %98 = vector.load %arg7[%c0_40, %c0_41] : memref<32x1xf32, #tpu.memory_space<vmem>>, vector<32x1xf32>
    %cst_42 = arith.constant dense<0.000000e+00> : vector<32x2xf32>
    %99 = tpu.matmul %96, %2, %cst_42 {dimension_numbers = #tpu.dot_dimension_numbers<[1], [0], [0], [1], [0, 0, 1, 1], [], []>} : vector<32x32xf32>, vector<32x2xf32>, vector<32x2xf32> -> vector<32x2xf32>
    %100 = arith.mulf %96, %96 : vector<32x32xf32>
    %cst_43 = arith.constant dense<0.000000e+00> : vector<32x2xf32>
    %101 = tpu.matmul %100, %2, %cst_43 {dimension_numbers = #tpu.dot_dimension_numbers<[1], [0], [0], [1], [0, 0, 1, 1], [], []>} : vector<32x32xf32>, vector<32x2xf32>, vector<32x2xf32> -> vector<32x2xf32>
    %cst_44 = arith.constant dense<0.000000e+00> : vector<32x2xf32>
    %102 = tpu.matmul %1, %99, %cst_44 {dimension_numbers = #tpu.dot_dimension_numbers<[1], [0], [0], [1], [0, 0, 1, 1], [], []>} : vector<32x32xf32>, vector<32x2xf32>, vector<32x2xf32> -> vector<32x2xf32>
    %cst_45 = arith.constant 1.562500e-02 : f32
    %103 = vector.broadcast %cst_45 : f32 to vector<32x2xf32>
    %104 = arith.mulf %102, %103 : vector<32x2xf32>
    %cst_46 = arith.constant dense<0.000000e+00> : vector<32x2xf32>
    %105 = tpu.matmul %1, %101, %cst_46 {dimension_numbers = #tpu.dot_dimension_numbers<[1], [0], [0], [1], [0, 0, 1, 1], [], []>} : vector<32x32xf32>, vector<32x2xf32>, vector<32x2xf32> -> vector<32x2xf32>
    %cst_47 = arith.constant 1.562500e-02 : f32
    %106 = vector.broadcast %cst_47 : f32 to vector<32x2xf32>
    %107 = arith.mulf %105, %106 : vector<32x2xf32>
    %108 = arith.mulf %104, %104 : vector<32x2xf32>
    %109 = arith.subf %107, %108 : vector<32x2xf32>
    %cst_48 = arith.constant 9.99999974E-6 : f32
    %110 = vector.broadcast %cst_48 : f32 to vector<32x2xf32>
    %111 = arith.addf %109, %110 : vector<32x2xf32>
    %112 = math.rsqrt %111 : vector<32x2xf32>
    %113 = vector.broadcast %97 : vector<32x1xf32> to vector<32x2xf32>
    %114 = arith.mulf %113, %112 : vector<32x2xf32>
    %115 = arith.mulf %104, %114 : vector<32x2xf32>
    %116 = vector.broadcast %98 : vector<32x1xf32> to vector<32x2xf32>
    %117 = arith.subf %116, %115 : vector<32x2xf32>
    %cst_49 = arith.constant dense<0.000000e+00> : vector<32x32xf32>
    %118 = tpu.matmul %114, %3, %cst_49 {dimension_numbers = #tpu.dot_dimension_numbers<[1], [0], [0], [1], [0, 0, 1, 1], [], []>} : vector<32x2xf32>, vector<2x32xf32>, vector<32x32xf32> -> vector<32x32xf32>
    %cst_50 = arith.constant dense<0.000000e+00> : vector<32x32xf32>
    %119 = tpu.matmul %117, %3, %cst_50 {dimension_numbers = #tpu.dot_dimension_numbers<[1], [0], [0], [1], [0, 0, 1, 1], [], []>} : vector<32x2xf32>, vector<2x32xf32>, vector<32x32xf32> -> vector<32x32xf32>
    %120 = arith.mulf %118, %96 : vector<32x32xf32>
    %121 = arith.addf %120, %119 : vector<32x32xf32>
    %cst_51 = arith.constant 2.000000e+01 : f32
    %122 = vector.broadcast %cst_51 : f32 to vector<32x32xf32>
    %123 = arith.minimumf %121, %122 : vector<32x32xf32>
    %124 = math.exp %123 : vector<32x32xf32>
    %cst_52 = arith.constant 1.000000e+00 : f32
    %125 = vector.broadcast %cst_52 : f32 to vector<32x32xf32>
    %126 = arith.addf %125, %124 : vector<32x32xf32>
    %cst_53 = arith.constant 1.000000e+00 : f32
    %127 = vector.broadcast %cst_53 : f32 to vector<32x32xf32>
    %128 = arith.addf %127, %124 : vector<32x32xf32>
    %129 = arith.mulf %126, %128 : vector<32x32xf32>
    %cst_54 = arith.constant 1.000000e+00 : f32
    %130 = vector.broadcast %cst_54 : f32 to vector<32x32xf32>
    %131 = arith.subf %129, %130 : vector<32x32xf32>
    %132 = arith.mulf %121, %131 : vector<32x32xf32>
    %cst_55 = arith.constant 1.000000e+00 : f32
    %133 = vector.broadcast %cst_55 : f32 to vector<32x32xf32>
    %134 = arith.addf %129, %133 : vector<32x32xf32>
    %135 = tpu.reciprocal %134 {approx = true} : vector<32x32xf32> -> vector<32x32xf32>
    %136 = arith.mulf %132, %135 : vector<32x32xf32>
    %c0_56 = arith.constant 0 : index
    %c0_57 = arith.constant 0 : index
    %137 = vector.load %arg12[%c0_56, %c0_57] : memref<64x32xbf16, #tpu.memory_space<vmem>>, vector<64x32xbf16>
    %c0_58 = arith.constant 0 : index
    %c0_59 = arith.constant 0 : index
    %138 = vector.load %arg1[%c0_58, %c0_59] : memref<32x2xf32, #tpu.memory_space<vmem>>, vector<32x2xf32>
    %cst_60 = arith.constant 2.000000e+01 : f32
    %139 = vector.broadcast %cst_60 : f32 to vector<32x2xf32>
    %140 = arith.minimumf %138, %139 : vector<32x2xf32>
    %141 = math.exp %140 : vector<32x2xf32>
    %cst_61 = arith.constant 1.000000e+00 : f32
    %142 = vector.broadcast %cst_61 : f32 to vector<32x2xf32>
    %143 = arith.addf %142, %141 : vector<32x2xf32>
    %cst_62 = arith.constant 1.000000e+00 : f32
    %144 = vector.broadcast %cst_62 : f32 to vector<32x2xf32>
    %145 = arith.addf %144, %141 : vector<32x2xf32>
    %146 = arith.mulf %143, %145 : vector<32x2xf32>
    %cst_63 = arith.constant 1.000000e+00 : f32
    %147 = vector.broadcast %cst_63 : f32 to vector<32x2xf32>
    %148 = arith.subf %146, %147 : vector<32x2xf32>
    %149 = arith.mulf %138, %148 : vector<32x2xf32>
    %cst_64 = arith.constant 1.000000e+00 : f32
    %150 = vector.broadcast %cst_64 : f32 to vector<32x2xf32>
    %151 = arith.addf %146, %150 : vector<32x2xf32>
    %152 = tpu.reciprocal %151 {approx = true} : vector<32x2xf32> -> vector<32x2xf32>
    %153 = arith.mulf %149, %152 : vector<32x2xf32>
    %154 = arith.truncf %153 : vector<32x2xf32> to vector<32x2xbf16>
    %cst_65 = arith.constant dense<0.000000e+00> : vector<64x2xf32>
    %155 = tpu.matmul %137, %154, %cst_65 {dimension_numbers = #tpu.dot_dimension_numbers<[1], [0], [0], [1], [0, 0, 1, 1], [], []>} : vector<64x32xbf16>, vector<32x2xbf16>, vector<64x2xf32> -> vector<64x2xf32>
    %c0_66 = arith.constant 0 : index
    %c0_67 = arith.constant 0 : index
    %156 = vector.load %arg13[%c0_66, %c0_67] : memref<64x1xf32, #tpu.memory_space<vmem>>, vector<64x1xf32>
    %157 = vector.broadcast %156 : vector<64x1xf32> to vector<64x2xf32>
    %158 = arith.addf %155, %157 : vector<64x2xf32>
    %159 = vector.extract_strided_slice %158 {offsets = [0, 0], sizes = [32, 2], strides = [1, 1]} : vector<64x2xf32> to vector<32x2xf32>
    %160 = vector.extract_strided_slice %158 {offsets = [32, 0], sizes = [32, 2], strides = [1, 1]} : vector<64x2xf32> to vector<32x2xf32>
    %c0_68 = arith.constant 0 : index
    %c0_69 = arith.constant 0 : index
    %161 = vector.load %arg2[%c0_68, %c0_69] : memref<32x2xf32, #tpu.memory_space<vmem>>, vector<32x2xf32>
    %162 = arith.mulf %161, %159 : vector<32x2xf32>
    %163 = arith.mulf %161, %160 : vector<32x2xf32>
    %c0_70 = arith.constant 0 : index
    %c0_71 = arith.constant 0 : index
    %164 = vector.load %arg3[%c0_70, %c0_71] : memref<32x2xf32, #tpu.memory_space<vmem>>, vector<32x2xf32>
    %165 = arith.addf %163, %164 : vector<32x2xf32>
    %cst_72 = arith.constant dense<0.000000e+00> : vector<32x32xf32>
    %166 = tpu.matmul %162, %3, %cst_72 {dimension_numbers = #tpu.dot_dimension_numbers<[1], [0], [0], [1], [0, 0, 1, 1], [], []>} : vector<32x2xf32>, vector<2x32xf32>, vector<32x32xf32> -> vector<32x32xf32>
    %167 = arith.mulf %166, %136 : vector<32x32xf32>
    %cst_73 = arith.constant dense<0.000000e+00> : vector<32x32xf32>
    %168 = tpu.matmul %165, %3, %cst_73 {dimension_numbers = #tpu.dot_dimension_numbers<[1], [0], [0], [1], [0, 0, 1, 1], [], []>} : vector<32x2xf32>, vector<2x32xf32>, vector<32x32xf32> -> vector<32x32xf32>
    %169 = arith.addf %167, %168 : vector<32x32xf32>
    %170 = tpu.iota {dimensions = array<i32: 1>} : vector<1x32xi32>
    %c16_i32_74 = arith.constant 16 : i32
    %c0_i32_75 = arith.constant 0 : i32
    %171 = arith.cmpi eq, %c16_i32_74, %c0_i32_75 : i32
    %c1_i32_76 = arith.constant 1 : i32
    %172 = arith.select %171, %c1_i32_76, %c16_i32_74 : i32
    %173 = vector.broadcast %172 : i32 to vector<1x32xi32>
    %174 = arith.remsi %170, %173 : vector<1x32xi32>
    %c0_i32_77 = arith.constant 0 : i32
    %175 = vector.broadcast %c0_i32_77 : i32 to vector<1x32xi32>
    %176 = arith.cmpi ne, %174, %175 : vector<1x32xi32>
    %c0_i32_78 = arith.constant 0 : i32
    %177 = vector.broadcast %c0_i32_78 : i32 to vector<1x32xi32>
    %178 = arith.cmpi slt, %174, %177 : vector<1x32xi32>
    %c0_i32_79 = arith.constant 0 : i32
    %179 = arith.cmpi slt, %172, %c0_i32_79 : i32
    %180 = vector.broadcast %179 : i1 to vector<1x32xi1>
    %181 = vector.broadcast %180 : vector<1x32xi1> to vector<1x32xi1>
    %182 = arith.xori %178, %181 : vector<1x32xi1>
    %183 = arith.andi %182, %176 : vector<1x32xi1>
    %184 = vector.broadcast %172 : i32 to vector<1x32xi32>
    %185 = arith.addi %174, %184 : vector<1x32xi32>
    %186 = arith.select %183, %185, %174 : vector<1x32xi1>, vector<1x32xi32>
    %c2_i32_80 = arith.constant 2 : i32
    %187 = tpu.dynamic_rotate %169 by %c2_i32_80 dim 1 : vector<32x32xf32>, i32 -> vector<32x32xf32>
    %c-2_i32_81 = arith.constant -2 : i32
    %188 = vector.broadcast %c-2_i32_81 : i32 to vector<1x32xi32>
    %189 = arith.addi %186, %188 : vector<1x32xi32>
    %c0_i32_82 = arith.constant 0 : i32
    %190 = vector.broadcast %c0_i32_82 : i32 to vector<1x32xi32>
    %191 = arith.cmpi sge, %189, %190 : vector<1x32xi32>
    %c-2_i32_83 = arith.constant -2 : i32
    %192 = vector.broadcast %c-2_i32_83 : i32 to vector<1x32xi32>
    %193 = arith.addi %186, %192 : vector<1x32xi32>
    %c16_i32_84 = arith.constant 16 : i32
    %194 = vector.broadcast %c16_i32_84 : i32 to vector<1x32xi32>
    %195 = arith.cmpi slt, %193, %194 : vector<1x32xi32>
    %196 = arith.andi %191, %195 : vector<1x32xi1>
    %cst_85 = arith.constant 0.000000e+00 : f32
    %197 = vector.shape_cast %196 : vector<1x32xi1> to vector<1x32xi1>
    %198 = vector.broadcast %197 : vector<1x32xi1> to vector<32x32xi1>
    %199 = vector.broadcast %cst_85 : f32 to vector<32x32xf32>
    %200 = arith.select %198, %187, %199 : vector<32x32xi1>, vector<32x32xf32>
    %c1_i32_86 = arith.constant 1 : i32
    %201 = tpu.dynamic_rotate %169 by %c1_i32_86 dim 1 : vector<32x32xf32>, i32 -> vector<32x32xf32>
    %c-1_i32_87 = arith.constant -1 : i32
    %202 = vector.broadcast %c-1_i32_87 : i32 to vector<1x32xi32>
    %203 = arith.addi %186, %202 : vector<1x32xi32>
    %c0_i32_88 = arith.constant 0 : i32
    %204 = vector.broadcast %c0_i32_88 : i32 to vector<1x32xi32>
    %205 = arith.cmpi sge, %203, %204 : vector<1x32xi32>
    %c-1_i32_89 = arith.constant -1 : i32
    %206 = vector.broadcast %c-1_i32_89 : i32 to vector<1x32xi32>
    %207 = arith.addi %186, %206 : vector<1x32xi32>
    %c16_i32_90 = arith.constant 16 : i32
    %208 = vector.broadcast %c16_i32_90 : i32 to vector<1x32xi32>
    %209 = arith.cmpi slt, %207, %208 : vector<1x32xi32>
    %210 = arith.andi %205, %209 : vector<1x32xi1>
    %cst_91 = arith.constant 0.000000e+00 : f32
    %211 = vector.shape_cast %210 : vector<1x32xi1> to vector<1x32xi1>
    %212 = vector.broadcast %211 : vector<1x32xi1> to vector<32x32xi1>
    %213 = vector.broadcast %cst_91 : f32 to vector<32x32xf32>
    %214 = arith.select %212, %201, %213 : vector<32x32xi1>, vector<32x32xf32>
    %c0_i32_92 = arith.constant 0 : i32
    %215 = vector.broadcast %c0_i32_92 : i32 to vector<1x32xi32>
    %216 = arith.addi %186, %215 : vector<1x32xi32>
    %c0_i32_93 = arith.constant 0 : i32
    %217 = vector.broadcast %c0_i32_93 : i32 to vector<1x32xi32>
    %218 = arith.cmpi sge, %216, %217 : vector<1x32xi32>
    %c0_i32_94 = arith.constant 0 : i32
    %219 = vector.broadcast %c0_i32_94 : i32 to vector<1x32xi32>
    %220 = arith.addi %186, %219 : vector<1x32xi32>
    %c16_i32_95 = arith.constant 16 : i32
    %221 = vector.broadcast %c16_i32_95 : i32 to vector<1x32xi32>
    %222 = arith.cmpi slt, %220, %221 : vector<1x32xi32>
    %223 = arith.andi %218, %222 : vector<1x32xi1>
    %cst_96 = arith.constant 0.000000e+00 : f32
    %224 = vector.shape_cast %223 : vector<1x32xi1> to vector<1x32xi1>
    %225 = vector.broadcast %224 : vector<1x32xi1> to vector<32x32xi1>
    %226 = vector.broadcast %cst_96 : f32 to vector<32x32xf32>
    %227 = arith.select %225, %169, %226 : vector<32x32xi1>, vector<32x32xf32>
    %c31_i32_97 = arith.constant 31 : i32
    %228 = tpu.dynamic_rotate %169 by %c31_i32_97 dim 1 : vector<32x32xf32>, i32 -> vector<32x32xf32>
    %c1_i32_98 = arith.constant 1 : i32
    %229 = vector.broadcast %c1_i32_98 : i32 to vector<1x32xi32>
    %230 = arith.addi %186, %229 : vector<1x32xi32>
    %c0_i32_99 = arith.constant 0 : i32
    %231 = vector.broadcast %c0_i32_99 : i32 to vector<1x32xi32>
    %232 = arith.cmpi sge, %230, %231 : vector<1x32xi32>
    %c1_i32_100 = arith.constant 1 : i32
    %233 = vector.broadcast %c1_i32_100 : i32 to vector<1x32xi32>
    %234 = arith.addi %186, %233 : vector<1x32xi32>
    %c16_i32_101 = arith.constant 16 : i32
    %235 = vector.broadcast %c16_i32_101 : i32 to vector<1x32xi32>
    %236 = arith.cmpi slt, %234, %235 : vector<1x32xi32>
    %237 = arith.andi %232, %236 : vector<1x32xi1>
    %cst_102 = arith.constant 0.000000e+00 : f32
    %238 = vector.shape_cast %237 : vector<1x32xi1> to vector<1x32xi1>
    %239 = vector.broadcast %238 : vector<1x32xi1> to vector<32x32xi1>
    %240 = vector.broadcast %cst_102 : f32 to vector<32x32xf32>
    %241 = arith.select %239, %228, %240 : vector<32x32xi1>, vector<32x32xf32>
    %c30_i32_103 = arith.constant 30 : i32
    %242 = tpu.dynamic_rotate %169 by %c30_i32_103 dim 1 : vector<32x32xf32>, i32 -> vector<32x32xf32>
    %c2_i32_104 = arith.constant 2 : i32
    %243 = vector.broadcast %c2_i32_104 : i32 to vector<1x32xi32>
    %244 = arith.addi %186, %243 : vector<1x32xi32>
    %c0_i32_105 = arith.constant 0 : i32
    %245 = vector.broadcast %c0_i32_105 : i32 to vector<1x32xi32>
    %246 = arith.cmpi sge, %244, %245 : vector<1x32xi32>
    %c2_i32_106 = arith.constant 2 : i32
    %247 = vector.broadcast %c2_i32_106 : i32 to vector<1x32xi32>
    %248 = arith.addi %186, %247 : vector<1x32xi32>
    %c16_i32_107 = arith.constant 16 : i32
    %249 = vector.broadcast %c16_i32_107 : i32 to vector<1x32xi32>
    %250 = arith.cmpi slt, %248, %249 : vector<1x32xi32>
    %251 = arith.andi %246, %250 : vector<1x32xi1>
    %cst_108 = arith.constant 0.000000e+00 : f32
    %252 = vector.shape_cast %251 : vector<1x32xi1> to vector<1x32xi1>
    %253 = vector.broadcast %252 : vector<1x32xi1> to vector<32x32xi1>
    %254 = vector.broadcast %cst_108 : f32 to vector<32x32xf32>
    %255 = arith.select %253, %242, %254 : vector<32x32xi1>, vector<32x32xf32>
    %c0_109 = arith.constant 0 : index
    %c0_110 = arith.constant 0 : index
    %256 = vector.load %arg9[%c0_109, %c0_110] : memref<32x1xf32, #tpu.memory_space<vmem>>, vector<32x1xf32>
    %257 = tpu.concatenate %200, %214, %227, %241 in 0 : vector<32x32xf32>, vector<32x32xf32>, vector<32x32xf32>, vector<32x32xf32> -> vector<128x32xf32>
    %258 = arith.truncf %257 : vector<128x32xf32> to vector<128x32xbf16>
    %c0_111 = arith.constant 0 : index
    %c0_112 = arith.constant 0 : index
    %259 = vector.load %arg8[%c0_111, %c0_112] : memref<32x160xbf16, #tpu.memory_space<vmem>>, vector<32x128xbf16>
    %cst_113 = arith.constant dense<0.000000e+00> : vector<32x32xf32>
    %260 = tpu.matmul %259, %258, %cst_113 {dimension_numbers = #tpu.dot_dimension_numbers<[1], [0], [0], [1], [0, 0, 1, 1], [], []>} : vector<32x128xbf16>, vector<128x32xbf16>, vector<32x32xf32> -> vector<32x32xf32>
    %261 = vector.broadcast %256 : vector<32x1xf32> to vector<32x32xf32>
    %262 = arith.addf %260, %261 : vector<32x32xf32>
    %263 = arith.truncf %255 : vector<32x32xf32> to vector<32x32xbf16>
    %c0_114 = arith.constant 0 : index
    %c128 = arith.constant 128 : index
    %264 = vector.load %arg8[%c0_114, %c128] : memref<32x160xbf16, #tpu.memory_space<vmem>>, vector<32x32xbf16>
    %cst_115 = arith.constant dense<0.000000e+00> : vector<32x32xf32>
    %265 = tpu.matmul %264, %263, %cst_115 {dimension_numbers = #tpu.dot_dimension_numbers<[1], [0], [0], [1], [0, 0, 1, 1], [], []>} : vector<32x32xbf16>, vector<32x32xbf16>, vector<32x32xf32> -> vector<32x32xf32>
    %266 = arith.addf %262, %265 : vector<32x32xf32>
    %c0_116 = arith.constant 0 : index
    %c0_117 = arith.constant 0 : index
    %267 = vector.load %arg10[%c0_116, %c0_117] : memref<32x1xf32, #tpu.memory_space<vmem>>, vector<32x1xf32>
    %c0_118 = arith.constant 0 : index
    %c0_119 = arith.constant 0 : index
    %268 = vector.load %arg11[%c0_118, %c0_119] : memref<32x1xf32, #tpu.memory_space<vmem>>, vector<32x1xf32>
    %cst_120 = arith.constant dense<0.000000e+00> : vector<32x2xf32>
    %269 = tpu.matmul %266, %2, %cst_120 {dimension_numbers = #tpu.dot_dimension_numbers<[1], [0], [0], [1], [0, 0, 1, 1], [], []>} : vector<32x32xf32>, vector<32x2xf32>, vector<32x2xf32> -> vector<32x2xf32>
    %270 = arith.mulf %266, %266 : vector<32x32xf32>
    %cst_121 = arith.constant dense<0.000000e+00> : vector<32x2xf32>
    %271 = tpu.matmul %270, %2, %cst_121 {dimension_numbers = #tpu.dot_dimension_numbers<[1], [0], [0], [1], [0, 0, 1, 1], [], []>} : vector<32x32xf32>, vector<32x2xf32>, vector<32x2xf32> -> vector<32x2xf32>
    %cst_122 = arith.constant dense<0.000000e+00> : vector<32x2xf32>
    %272 = tpu.matmul %1, %269, %cst_122 {dimension_numbers = #tpu.dot_dimension_numbers<[1], [0], [0], [1], [0, 0, 1, 1], [], []>} : vector<32x32xf32>, vector<32x2xf32>, vector<32x2xf32> -> vector<32x2xf32>
    %cst_123 = arith.constant 1.562500e-02 : f32
    %273 = vector.broadcast %cst_123 : f32 to vector<32x2xf32>
    %274 = arith.mulf %272, %273 : vector<32x2xf32>
    %cst_124 = arith.constant dense<0.000000e+00> : vector<32x2xf32>
    %275 = tpu.matmul %1, %271, %cst_124 {dimension_numbers = #tpu.dot_dimension_numbers<[1], [0], [0], [1], [0, 0, 1, 1], [], []>} : vector<32x32xf32>, vector<32x2xf32>, vector<32x2xf32> -> vector<32x2xf32>
    %cst_125 = arith.constant 1.562500e-02 : f32
    %276 = vector.broadcast %cst_125 : f32 to vector<32x2xf32>
    %277 = arith.mulf %275, %276 : vector<32x2xf32>
    %278 = arith.mulf %274, %274 : vector<32x2xf32>
    %279 = arith.subf %277, %278 : vector<32x2xf32>
    %cst_126 = arith.constant 9.99999974E-6 : f32
    %280 = vector.broadcast %cst_126 : f32 to vector<32x2xf32>
    %281 = arith.addf %279, %280 : vector<32x2xf32>
    %282 = math.rsqrt %281 : vector<32x2xf32>
    %283 = vector.broadcast %267 : vector<32x1xf32> to vector<32x2xf32>
    %284 = arith.mulf %283, %282 : vector<32x2xf32>
    %285 = arith.mulf %274, %284 : vector<32x2xf32>
    %286 = vector.broadcast %268 : vector<32x1xf32> to vector<32x2xf32>
    %287 = arith.subf %286, %285 : vector<32x2xf32>
    %cst_127 = arith.constant dense<0.000000e+00> : vector<32x32xf32>
    %288 = tpu.matmul %284, %3, %cst_127 {dimension_numbers = #tpu.dot_dimension_numbers<[1], [0], [0], [1], [0, 0, 1, 1], [], []>} : vector<32x2xf32>, vector<2x32xf32>, vector<32x32xf32> -> vector<32x32xf32>
    %cst_128 = arith.constant dense<0.000000e+00> : vector<32x32xf32>
    %289 = tpu.matmul %287, %3, %cst_128 {dimension_numbers = #tpu.dot_dimension_numbers<[1], [0], [0], [1], [0, 0, 1, 1], [], []>} : vector<32x2xf32>, vector<2x32xf32>, vector<32x32xf32> -> vector<32x32xf32>
    %290 = arith.mulf %288, %266 : vector<32x32xf32>
    %291 = arith.addf %290, %289 : vector<32x32xf32>
    %cst_129 = arith.constant 2.000000e+01 : f32
    %292 = vector.broadcast %cst_129 : f32 to vector<32x32xf32>
    %293 = arith.minimumf %291, %292 : vector<32x32xf32>
    %294 = math.exp %293 : vector<32x32xf32>
    %cst_130 = arith.constant 1.000000e+00 : f32
    %295 = vector.broadcast %cst_130 : f32 to vector<32x32xf32>
    %296 = arith.addf %295, %294 : vector<32x32xf32>
    %cst_131 = arith.constant 1.000000e+00 : f32
    %297 = vector.broadcast %cst_131 : f32 to vector<32x32xf32>
    %298 = arith.addf %297, %294 : vector<32x32xf32>
    %299 = arith.mulf %296, %298 : vector<32x32xf32>
    %cst_132 = arith.constant 1.000000e+00 : f32
    %300 = vector.broadcast %cst_132 : f32 to vector<32x32xf32>
    %301 = arith.subf %299, %300 : vector<32x32xf32>
    %302 = arith.mulf %291, %301 : vector<32x32xf32>
    %cst_133 = arith.constant 1.000000e+00 : f32
    %303 = vector.broadcast %cst_133 : f32 to vector<32x32xf32>
    %304 = arith.addf %299, %303 : vector<32x32xf32>
    %305 = tpu.reciprocal %304 {approx = true} : vector<32x32xf32> -> vector<32x32xf32>
    %306 = arith.mulf %302, %305 : vector<32x32xf32>
    %c0_134 = arith.constant 0 : index
    %c0_135 = arith.constant 0 : index
    %307 = vector.load %arg14[%c0_134, %c0_135] : memref<32x16xbf16, #tpu.memory_space<vmem>>, vector<32x16xbf16>
    %308 = arith.truncf %0 : vector<16x32xf32> to vector<16x32xbf16>
    %cst_136 = arith.constant dense<0.000000e+00> : vector<32x32xf32>
    %309 = tpu.matmul %307, %308, %cst_136 {dimension_numbers = #tpu.dot_dimension_numbers<[1], [0], [0], [1], [0, 0, 1, 1], [], []>} : vector<32x16xbf16>, vector<16x32xbf16>, vector<32x32xf32> -> vector<32x32xf32>
    %c0_137 = arith.constant 0 : index
    %c0_138 = arith.constant 0 : index
    %310 = vector.load %arg15[%c0_137, %c0_138] : memref<32x1xf32, #tpu.memory_space<vmem>>, vector<32x1xf32>
    %311 = vector.broadcast %310 : vector<32x1xf32> to vector<32x32xf32>
    %312 = arith.addf %309, %311 : vector<32x32xf32>
    %313 = arith.addf %306, %312 : vector<32x32xf32>
    %c0_139 = arith.constant 0 : index
    %c0_140 = arith.constant 0 : index
    %314 = vector.load %arg19[%c0_139, %c0_140] : memref<32x32xf32, #tpu.memory_space<vmem>>, vector<32x32xf32>
    tpu.vector_store %arg19[%c0_139, %c0_140], %313 {strides = array<i32>} : memref<32x32xf32, #tpu.memory_space<vmem>>, vector<32x32xf32>,
    return
  }
}

</mosaic_0001>

<bundles_post_ra>
// kernel: _lambda_.1
= control target key start
LH: loop header
LB: loop body
LE: loop exit
PB: predicated region body
PF: predicated region fallthrough
CT: control target
= control target key end

     0   :  { %s2921_s0 = inlined_call_operand.vmem [shape: f32[16,32], index: 0, kind: input, shape index: {}]   ;;  %s2922_s1 = inlined_call_operand.vmem [shape: f32[32,2], index: 1, kind: input, shape index: {}]   ;;  %s2923_s2 = inlined_call_operand.vmem [shape: f32[32,2], index: 2, kind: input, shape index: {}]   ;;  %s2924_s3 = inlined_call_operand.vmem [shape: f32[32,2], index: 3, kind: input, shape index: {}]   ;;  %s2925_s4 = inlined_call_operand.hbm [shape: bf16[32,80], index: 4, kind: input, shape index: {}]   ;;  %s2926_s5 = inlined_call_operand.hbm [shape: f32[32,1], index: 5, kind: input, shape index: {}]   ;;  %s2927_s6 = inlined_call_operand.hbm [shape: f32[32,1], index: 6, kind: input, shape index: {}]   ;;  %s2928_s7 = inlined_call_operand.hbm [shape: f32[32,1], index: 7, kind: input, shape index: {}]   ;;  %s2929_s8 = inlined_call_operand.hbm [shape: bf16[32,160], index: 8, kind: input, shape index: {}]   ;;  %s2930_s9 = inlined_call_operand.hbm [shape: f32[32,1], index: 9, kind: input, shape index: {}]   ;;  %s2931_s10 = inlined_call_operand.hbm [shape: f32[32,1], index: 10, kind: input, shape index: {}]   ;;  %s2932_s11 = inlined_call_operand.vmem [shape: f32[32,1], index: 11, kind: input, shape index: {}]   ;;  %s2933_s12 = inlined_call_operand.vmem [shape: bf16[64,32], index: 12, kind: input, shape index: {}]   ;;  %s2934_s13 = inlined_call_operand.vmem [shape: f32[64,1], index: 13, kind: input, shape index: {}]   ;;  %s2935_s14 = inlined_call_operand.vmem [shape: bf16[32,16], index: 14, kind: input, shape index: {}]   ;;  %s2936_s15 = inlined_call_operand.vmem [shape: f32[32,1], index: 15, kind: input, shape index: {}]   ;;  %s2937_s16 = inlined_call_operand.vmem [shape: f32[32,32], index: 16, kind: input, shape index: {}]   ;;  %s2938_s17 = inlined_call_operand.vmem [shape: f32[32,2], index: 17, kind: input, shape index: {}]   ;;  %s2939_s18 = inlined_call_operand.vmem [shape: f32[2,32], index: 18, kind: input, shape index: {}]   ;;  %s2940_s19 = inlined_call_operand.vmem [shape: f32[32,32], index: 19, kind: output, shape index: {}]  }
   0x1   :  { %2945 = sst [smem:[#allocation17_spill]] %s2921_s0 }
   0x2   :  { %2946 = sst [smem:[#allocation18_spill]] %s2922_s1 }
   0x3   :  { %2947 = sst [smem:[#allocation19_spill]] %s2923_s2 }
   0x4   :  { %2948 = sst [smem:[#allocation20_spill]] %s2924_s3 }
   0x5   :  { %24 = vsyncpa [#allocation3], 0 }
   0x6   :  { %25 = vsyncpa [#allocation5], 0 }
   0x7   :  { %26 = vsyncpa [#allocation8], 0  ;;  %s53_s20 = sshll.u32 %s2926_s5, 4  ;;  %s54_s20 = int_to_ptr.hbm [resolvable:$true] %s53_s20 }
   0x8   :  { %27 = vsyncpa [#allocation11], 0  ;;  %s2246_s21 = smov [#allocation4]   ;;  %s79_s23 = sshll.u32 %s2928_s7, 4  ;;  %s80_s23 = int_to_ptr.hbm [resolvable:$true] %s79_s23 }
   0x9   :  { %s55_s1 = sshll.u32 %s2246_s21, 4  ;;  %s2247_s24 = smov 128   ;;  %s56_s1 = int_to_ptr.vmem [resolvable:$true] %s55_s1 }
   0xa   :  { %s2248_s25 = smov 8   ;;  %s2249_s3 = smov [#allocation7]  }
   0xb   :  { %61 = dma.hbm_to_vmem [thread:$0]  %s54_s20, 512, %s56_s1, [#allocation5], %s2247_s24, %s2247_s24, %s2248_s25  }
   0xc   :  { %s81_s26 = sshll.u32 %s2249_s3, 4  ;;  %s105_s28 = sshll.u32 %s2930_s9, 4  ;;  %s82_s26 = int_to_ptr.vmem [resolvable:$true] %s81_s26  ;;  %s106_s28 = int_to_ptr.hbm [resolvable:$true] %s105_s28 }
   0xd   :  { %87 = dma.hbm_to_vmem [thread:$0]  %s80_s23, 512, %s82_s26, [#allocation8], %s2247_s24, %s2247_s24, %s2248_s25  }
   0xe   :  { %s40_s0 = sshll.u32 %s2925_s4, 4  ;;  %s2250_s30 = smov [#allocation10]   ;;  %s41_s0 = int_to_ptr.hbm [resolvable:$true] %s40_s0 }
   0xf   :  { %s107_s21 = sshll.u32 %s2250_s30, 4  ;;  %s2251_s20 = smov [#allocation2]   ;;  %s108_s21 = int_to_ptr.vmem [resolvable:$true] %s107_s21 }
  0x10   :  { %113 = dma.hbm_to_vmem [thread:$0]  %s106_s28, 512, %s108_s21, [#allocation11], %s2247_s24, %s2247_s24, %s2248_s25  }
  0x11   :  { %s42_s9 = sshll.u32 %s2251_s20, 4  ;;  %s2252_s1 = smov 64   ;;  %s43_s9 = int_to_ptr.vmem [resolvable:$true] %s42_s9 }
  0x12   :  { %s2253_s22 = smov 4   ;;  %s66_s3 = sshll.u32 %s2927_s6, 4  ;;  %s67_s3 = int_to_ptr.hbm [resolvable:$true] %s66_s3 }
  0x13   :  { %48 = dma.hbm_to_vmem [thread:$0]  %s41_s0, 256, %s43_s9, [#allocation3], %s2252_s1, %s2252_s1, %s2253_s22  }
  0x14   :  { %s2254_s4 = smov [#allocation6]   ;;  %s92_s7 = sshll.u32 %s2929_s8, 4  ;;  %s93_s7 = int_to_ptr.hbm [resolvable:$true] %s92_s7 }
  0x15   :  { %s68_s26 = sshll.u32 %s2254_s4, 4  ;;  %s2255_s28 = smov [#allocation9]   ;;  %s69_s26 = int_to_ptr.vmem [resolvable:$true] %s68_s26 }
  0x16   :  { %74 = dma.hbm_to_vmem [thread:$0]  %s67_s3, 512, %s69_s26, [#allocation5], %s2247_s24, %s2247_s24, %s2248_s25  }
  0x17   :  { %s94_s29 = sshll.u32 %s2255_s28, 4  ;;  %s118_s21 = sshll.u32 %s2931_s10, 4  ;;  %s95_s29 = int_to_ptr.vmem [resolvable:$true] %s94_s29  ;;  %s119_s21 = int_to_ptr.hbm [resolvable:$true] %s118_s21 }
  0x18   :  { %100 = dma.hbm_to_vmem [thread:$0]  %s93_s7, 512, %s95_s29, [#allocation8], %s2247_s24, %s2247_s24, %s2248_s25  }
  0x19   :  { %s2256_s6 = smov [#allocation12]  }
  0x1a   :  { %s120_s20 = sshll.u32 %s2256_s6, 4  ;;  %s121_s20 = int_to_ptr.vmem [resolvable:$true] %s120_s20 }
  0x1b   :  { %126 = dma.hbm_to_vmem [thread:$0]  %s119_s21, 512, %s121_s20, [#allocation11], %s2247_s24, %s2247_s24, %s2248_s25  }
  0x1c   :  { %2238 = dma.done.wait [#allocation3], 256  }
  0x1d   :  { %2239 = vsyncadd [#allocation3], 4294967040 }
  0x1e   :  { %2240 = dma.done.wait [#allocation5], 1024  }
  0x1f   :  { %2241 = vsyncadd [#allocation5], 4294966272 }
  0x20   :  { %2242 = dma.done.wait [#allocation8], 1024  }
  0x21   :  { %2243 = vsyncadd [#allocation8], 4294966272 }
  0x22   :  { %2244 = dma.done.wait [#allocation11], 1024  }
  0x23   :  { %2245 = vsyncadd [#allocation11], 4294966272  ;;  %s2949_s9 = sld [smem:[#allocation17_spill]]  ;;  %s2257_s24 = smov 32   ;;  %vm197_vm0 = vcmask 1047808   ;;  %v275_v15 = vld [vmem:[#allocation4] sm:$0xff]  ;;  %v183_v22 = vlaneseq }
  0x24   :  { %s2258_s25 = smov 97   ;;  %s2259_s2 = smov 126   ;;  %v276_v16 = vld [vmem:[#allocation4 + $0x8] sm:$0xff]  ;;  %v2262_v17 = vmov 0   ;;  %v348_v18 = vld [vmem:[#allocation7] sm:$0xff]  ;;  %v278_v19 = vld [vmem:[#allocation4 + $0x18] sm:$0xff] }
  0x25   :  { %s2260_s23 = smov 98   ;;  %s2261_s3 = smov 127   ;;  %1944 = vset.pattern.permute.xlu1 %v2262_v17  ;;  %1943 = vset.pattern.permute.xlu0 %v2262_v17  ;;  %v346_v20 = vld [vmem:[#allocation6 + $0x10] sm:$0xff]  ;;  %v345_v21 = vld [vmem:[#allocation6 + $0x8] sm:$0xff]  ;;  %v184_v23 = vand.u32 127, %v183_v22  ;;  %v351_v24 = vld [vmem:[#allocation7 + $0x18] sm:$0xff] }
  0x26   :  { %1945 = vset.pattern.permute.xlu2 %v2262_v17  ;;  %v350_v25 = vld [vmem:[#allocation7 + $0x10] sm:$0xff]  ;;  %s2950_s27 = sld [smem:[#allocation18_spill]]  ;;  %v815_v34 = vld [vmem:[%s2934_s13 + $0x28] sm:$0xff]  ;;  %v344_v47 = vld [vmem:[#allocation6] sm:$0xff]  ;;  %vm318_vm9 = vcmask 654336   ;;  %vm352_vm10 = vcmask 261120  }
  0x27   :  { %v2428_v26 = vand.u32 15, %v184_v23  ;;  %v277_v35 = vld [vmem:[#allocation4 + $0x10] sm:$0xff]  ;;  %v812_v51 = vld [vmem:[%s2934_s13 + $0x10] sm:$0xff]  ;;  %v811_v52 = vld [vmem:[%s2934_s13 + $0x8] sm:$0xff]  ;;  %vm634_vm11 = vcmask 1041408   ;;  %vm621_vm12 = vcmask 15360  }
  0x28   :  { %v814_v36 = vld [vmem:[%s2934_s13 + $0x20] sm:$0xff]  ;;  %s2960_s28 = sld [smem:[#allocation20_spill]] }
  0x29   :  { %v2405_v0 = vld [vmem:[%s2949_s9] sm:$0xff]  ;;  %v2410_v1 = vld [vmem:[%s2949_s9 + $0x8] sm:$0xff]  ;;  %v261_v31 = vadd.s32 2, %v2428_v26  ;;  %v247_v50 = vadd.s32 1, %v2428_v26 }
  0x2a   :  { %v1913_v2 = vpack.i.bf16 %v2410_v1, %v2405_v0  ;;  %v1830_v46 = vld [vmem:[#allocation9 + $0x14] sm:$0xf] }
  0x2b   :  { %vm263_vm1 = vcmp.lt.s32.totalorder %v261_v31, 16  ;;  %vm249_vm3 = vcmp.lt.s32.totalorder %v247_v50, 16  ;;  %v347_v31 = vld [vmem:[#allocation6 + $0x18] sm:$0xff] }
  0x2c   :  { %1914 = vrot.lane.b32.xlu0 %v1913_v2, %s2257_s24  ;;  %v2433_v27 = vld [vmem:[%s2950_s27 + $0x10] sm:$0xff]  ;;  %v2438_v28 = vld [vmem:[%s2950_s27 + $0x18] sm:$0xff]  ;;  %v2452_v37 = vld [vmem:[%s2950_s27] sm:$0xff] }
  0x2d   :  { %v770_v29 = vmin.f32 %v2433_v27, 20.0  ;;  %v771_v30 = vmin.f32 %v2438_v28, 20.0  ;;  %v2457_v38 = vld [vmem:[%s2950_s27 + $0x8] sm:$0xff]  ;;  %v768_v39 = vmin.f32 %v2452_v37, 20.0  ;;  %vm2461_vm2 = vmpackc.low %vm263_vm1, %vm263_vm1 }
  0x2e   :  { %v769_v40 = vmin.f32 %v2457_v38, 20.0  ;;  %vm2474_vm4 = vmpackc.low %vm249_vm3, %vm249_vm3  ;;  %v1883_v50 = vld [vmem:[%s2933_s12 + $0x8] sm:$0xff] }
  0x2f   :  { %v776_v32 = vmul.f32 1.442695, %v770_v29  ;;  %v778_v33 = vmul.f32 1.442695, %v771_v30  ;;  %v772_v44 = vmul.f32 1.442695, %v768_v39 }
  0x30   :  { %v774_v45 = vmul.f32 1.442695, %v769_v40  ;;  %v1889_v30 = vld [vmem:[#allocation9 + $0x18] sm:$0xf0] }
  0x31   :  { %2006 = vpow2.f32 %v776_v32 }
  0x32   :  { %2008 = vpow2.f32 %v778_v33 }
  0x33   :  { %2010 = vpow2.f32 %v772_v44 }
  0x34   :  { %2012 = vpow2.f32 %v774_v45  ;;  %v816_v45 = vld [vmem:[%s2934_s13 + $0x30] sm:$0xff] }
  0x37   :  { %v2007_v48 = vpop.eup %2006 }
  0x38   :  { %v2009_v53 = vpop.eup %2008  ;;  %v782_v54 = vadd.f32 1.0, %v2007_v48  ;;  %v813_v48 = vld [vmem:[%s2934_s13 + $0x18] sm:$0xff] }
  0x39   :  { %v783_v55 = vadd.f32 1.0, %v2009_v53  ;;  %v2011_v61 = vpop.eup %2010  ;;  %v2538_v53 = vld [vmem:[%s2938_s17 + $0x8] sm:$0xff] }
  0x3a   :  { %v786_v57 = vmul.f32 %v782_v54, %v782_v54  ;;  %v1884_v54 = vld [vmem:[%s2933_s12 + $0x10] sm:$0xff] }
  0x3b   :  { %v787_v58 = vmul.f32 %v783_v55, %v783_v55  ;;  %v1885_v55 = vld [vmem:[%s2933_s12 + $0x18] sm:$0xff] }
  0x3c   :  { %v798_v60 = vadd.f32 1.0, %v786_v57 }
  0x3d   :  { %v799_v2 = vadd.f32 1.0, %v787_v58 }
  0x3e   :  { %2014 = vrcp.f32 %v798_v60 }
  0x3f   :  { %2016 = vrcp.f32 %v799_v2 }
  0x9e   :  { %v1915_v3 = vpop.permute.xlu0 %1914 }
  0x9f   :  { %v1917_v4 = vunpack.i.h.bf16 %v1915_v3  ;;  %v1916_v5 = vunpack.i.l.bf16 %v1915_v3  ;;  %v2013_v3 = vpop.eup %2012 }
  0xa1   :  { %v200_v6 = vsel %vm197_vm0, %v1916_v5, %v2405_v0  ;;  %v203_v7 = vsel %vm197_vm0, %v1917_v4, %v2410_v1  ;;  %v780_v5 = vadd.f32 1.0, %v2011_v61 }
  0xa2   :  { %v1918_v8 = vpack.i.bf16 %v203_v7, %v200_v6  ;;  %v226_v7 = vadd.s32 4294967295, %v2428_v26 }
  0xa4   :  { %1919 = vrot.lane.b32.xlu0 %v1918_v8, %s2257_s24  ;;  %v781_v8 = vadd.f32 1.0, %v2013_v3  ;;  %vm227_vm5 = vcmp.ge.s32.totalorder %v226_v7, 0 }
  0xa5   :  { %vm2492_vm6 = vmpackc.low %vm227_vm5, %vm227_vm5 }
  0xac   :  { %290 = vperm.xlu0 %1943, %v275_v15   ;;  %v2486_v15 = vpack.c.bf16 %v2410_v1, %v2405_v0 }
  0xb4   :  { %599 = vperm.xlu0 %1943, %v348_v18  }
  0xbc   :  { %581 = vperm.xlu0 %1943, %v346_v20  }
  0xc4   :  { %614 = vperm.xlu0 %1943, %v351_v24   ;;  %v2015_v24 = vpop.eup %2014 }
  0xcc   :  { %845 = vperm.xlu0 %1943, %v815_v34  }
  0xd4   :  { %830 = vperm.xlu0 %1943, %v812_v51   ;;  %v2526_v51 = vld [vmem:[%s2938_s17 + $0x18] sm:$0xff] }
  0xd5   :  { %377 = vmatpush.msra.mxu1 %v2526_v51  ;;  %422 = vmatpush.msra.mxu2 %v2526_v51 }
 0x116   :  { %v1920_v9 = vpop.permute.xlu0 %1919 }
 0x117   :  { %v1922_v10 = vunpack.i.h.bf16 %v1920_v9  ;;  %v1921_v11 = vunpack.i.l.bf16 %v1920_v9  ;;  %v349_v9 = vld [vmem:[#allocation7 + $0x8] sm:$0xff] }
 0x119   :  { %v208_v12 = vsel %vm197_vm0, %v1921_v11, %v2405_v0  ;;  %v209_v13 = vsel %vm197_vm0, %v1922_v10, %v2410_v1  ;;  %v817_v10 = vld [vmem:[%s2934_s13 + $0x38] sm:$0xff]  ;;  %v1766_v11 = vadd.f32 -1.0, %v786_v57  ;;  %v2017_v0 = vpop.eup %2016 }
 0x11a   :  { %v1933_v14 = vpack.i.bf16 %v209_v13, %v208_v12  ;;  %v1767_v12 = vadd.f32 -1.0, %v787_v58  ;;  %v784_v13 = vmul.f32 %v780_v5, %v780_v5 }
 0x11b   :  { %v794_v18 = vmul.f32 %v1766_v11, %v2433_v27 }
 0x11c   :  { %1934 = vrot.lane.b32.xlu2 %v1933_v14, %s2258_s25  ;;  %1924 = vrot.lane.b32.xlu1 %v1933_v14, %s2259_s2  ;;  %v796_v20 = vadd.f32 1.0, %v784_v13  ;;  %v1764_v22 = vadd.f32 -1.0, %v784_v13 }
 0x11d   :  { %v806_v27 = vmul.f32 %v2015_v24, %v794_v18  ;;  %v2610_v24 = vld [vmem:[%s2937_s16 + $0x8] sm:$0xff] }
 0x11e   :  { %2018 = vrcp.f32 %v796_v20  ;;  %v792_v33 = vmul.f32 %v1764_v22, %v2452_v37  ;;  %v291_v57 = vpop.permute.xlu0 %290  ;;  %v2590_v20 = vld [vmem:[%s2937_s16] sm:$0xff] }
 0x11f   :  { %v2597_v22 = vld [vmem:[%s2939_s18] sm:$0x3] }
 0x124   :  { %1939 = vrot.lane.b32.xlu2 %v1933_v14, %s2260_s23  ;;  %1929 = vrot.lane.b32.xlu1 %v1933_v14, %s2261_s3 }
 0x12c   :  { %295 = vperm.xlu1 %1944, %v276_v16   ;;  %300 = vperm.xlu2 %1945, %v277_v35   ;;  %v785_v16 = vmul.f32 %v781_v8, %v781_v8  ;;  %v2019_v35 = vpop.eup %2018 }
 0x12e   :  { %v797_v23 = vadd.f32 1.0, %v785_v16  ;;  %v1765_v29 = vadd.f32 -1.0, %v785_v16 }
 0x130   :  { %2020 = vrcp.f32 %v797_v23  ;;  %v793_v34 = vmul.f32 %v1765_v29, %v2457_v38  ;;  %v810_v38 = vld [vmem:[%s2934_s13] sm:$0xff]  ;;  %s2959_s13 = sld [smem:[#allocation19_spill]] }
 0x134   :  { %305 = vperm.xlu1 %1944, %v278_v19   ;;  %571 = vperm.xlu2 %1945, %v344_v47   ;;  %v795_v19 = vmul.f32 %v1767_v12, %v2438_v28  ;;  %v1881_v47 = vld [vmem:[#allocation2 + $0x8] sm:$0xff] }
 0x136   :  { %v807_v28 = vmul.f32 %v2017_v0, %v795_v19  ;;  %v2021_v40 = vpop.eup %2020 }
 0x137   :  { %v805_v44 = vmul.f32 %v2021_v40, %v793_v34  ;;  %v2657_v40 = vld [vmem:[%s2959_s13] sm:$0xff] }
 0x138   :  { %v809_v39 = vpack.c.bf16 %v807_v28, %v806_v27 }
 0x13c   :  { %576 = vperm.xlu1 %1944, %v345_v21   ;;  %604 = vperm.xlu2 %1945, %v349_v9   ;;  %v210_v21 = vadd.s32 4294967294, %v2428_v26 }
 0x13e   :  { %vm211_vm7 = vcmp.ge.s32.totalorder %v210_v21, 0 }
 0x13f   :  { %vm2500_vm8 = vmpackc.low %vm211_vm7, %vm211_vm7 }
 0x144   :  { %609 = vperm.xlu1 %1944, %v350_v25   ;;  %586 = vperm.xlu2 %1945, %v347_v31   ;;  %v2640_v31 = vld [vmem:[%s2937_s16 + $0x18] sm:$0xff] }
 0x14c   :  { %840 = vperm.xlu1 %1944, %v814_v36   ;;  %820 = vperm.xlu2 %1945, %v810_v38   ;;  %v2666_v38 = vld [vmem:[%s2959_s13 + $0x8] sm:$0xff] }
 0x14d   :  { %v1887_v36 = vld [vmem:[#allocation9 + $0x14] sm:$0xf0] }
 0x154   :  { %825 = vperm.xlu1 %1944, %v811_v52   ;;  %850 = vperm.xlu2 %1945, %v816_v45   ;;  %v2531_v52 = vld [vmem:[%s2938_s17 + $0x10] sm:$0xff] }
 0x155   :  { %378 = vmatpush.msra.mxu1 %v2531_v52  ;;  %423 = vmatpush.msra.mxu2 %v2531_v52 }
 0x157   :  { %379 = vmatpush.msra.mxu1 %v2538_v53  ;;  %424 = vmatpush.msra.mxu2 %v2538_v53 }
 0x15c   :  { %855 = vperm.xlu1 %1944, %v817_v10   ;;  %835 = vperm.xlu2 %1945, %v813_v48  }
 0x176   :  { %v1935_v56 = vpop.permute.xlu2 %1934 }
 0x177   :  { %v1937_v14 = vunpack.i.h.bf16 %v1935_v56  ;;  %v1936_v17 = vunpack.i.l.bf16 %v1935_v56  ;;  %v2555_v56 = vld [vmem:[%s2938_s17] sm:$0xff] }
 0x178   :  { %380 = vmatpush.msra.mxu1 %v2555_v56  ;;  %425 = vmatpush.msra.mxu2 %v2555_v56 }
 0x179   :  { %v1727_v1 = vpack.c.bf16 %v1937_v14, %v1936_v17 }
 0x17a   :  { %1750 = vmatpush.msk.msrb.mxu2 %vm634_vm11, %v2597_v22 }
 0x17e   :  { %v1940_v25 = vpop.permute.xlu2 %1939 }
 0x17f   :  { %v1942_v32 = vunpack.i.h.bf16 %v1940_v25  ;;  %v1941_v26 = vunpack.i.l.bf16 %v1940_v25  ;;  %v2616_v25 = vpop.permute.xlu0 %599 }
 0x186   :  { %v301_v3 = vpop.permute.xlu2 %300 }
 0x187   :  { %v2633_v27 = vpop.permute.xlu0 %581 }
 0x18e   :  { %v1925_v41 = vpop.permute.xlu1 %1924  ;;  %v2605_v23 = vpop.permute.xlu2 %571 }
 0x18f   :  { %v1927_v42 = vunpack.i.h.bf16 %v1925_v41  ;;  %v1926_v43 = vunpack.i.l.bf16 %v1925_v41  ;;  %v1730_v41 = vpack.c.bf16 %v1942_v32, %v1941_v26 }
 0x191   :  { %v1721_v49 = vpack.c.bf16 %v1927_v42, %v1926_v43  ;;  %v804_v42 = vmul.f32 %v2019_v35, %v792_v33  ;;  %v1880_v43 = vld [vmem:[#allocation2] sm:$0xff]  ;;  %v2648_v33 = vpop.permute.xlu0 %614 }
 0x193   :  { %1722 = vmatpush.bf16.msk.msra.mxu0 %vm2461_vm2, %v1721_v49  ;;  %v808_v37 = vpack.c.bf16 %v805_v44, %v804_v42  ;;  %v1882_v49 = vld [vmem:[%s2933_s12] sm:$0xff] }
 0x196   :  { %v1930_v59 = vpop.permute.xlu1 %1929  ;;  %v2622_v0 = vpop.permute.xlu2 %604 }
 0x197   :  { %v1932_v62 = vunpack.i.h.bf16 %v1930_v59  ;;  %v1931_v63 = vunpack.i.l.bf16 %v1930_v59 }
 0x199   :  { %v1724_v6 = vpack.c.bf16 %v1932_v62, %v1931_v63 }
 0x19b   :  { %1725 = vmatpush.bf16.msk.msra.mxu0 %vm2474_vm4, %v1724_v6 }
 0x19e   :  { %v296_v61 = vpop.permute.xlu1 %295  ;;  %v2642_v32 = vpop.permute.xlu2 %586 }
 0x19f   :  { %330 = vmatpush.bf16.msra.mxu0 %v2486_v15 }
 0x1a3   :  { %1728 = vmatpush.bf16.msk.msra.mxu0 %vm2492_vm6, %v1727_v1  ;;  %v2627_v1 = vld [vmem:[%s2937_s16 + $0x10] sm:$0xff] }
 0x1a6   :  { %v306_v8 = vpop.permute.xlu1 %305  ;;  %v821_v35 = vpop.permute.xlu2 %820 }
 0x1a7   :  { %1731 = vmatpush.bf16.msk.msra.mxu0 %vm2500_vm8, %v1730_v41 }
 0x1aa   :  { %1732 = vmatmul.msk.bf16.vlgmr.msra.gmra.mxu0 %vm318_vm9, %v1880_v43  ;;  %v2660_v43 = vpop.permute.xlu0 %845 }
 0x1ab   :  { %896 = vmatpush.bf16.msrb.mxu0 %v809_v39 }
 0x1ae   :  { %v2620_v29 = vpop.permute.xlu1 %576  ;;  %v2669_v48 = vpop.permute.xlu2 %850 }
 0x1af   :  { %897 = vmatpush.bf16.msrb.mxu0 %v808_v37 }
 0x1b6   :  { %v2635_v28 = vpop.permute.xlu1 %609 }
 0x1ba   :  { %1733 = vmatmul.msk.bf16.gmra.mxu0 %vm318_vm9, %v1881_v47 }
 0x1be   :  { %v2650_v34 = vpop.permute.xlu1 %840 }
 0x1c6   :  { %v826_v44 = vpop.permute.xlu1 %825 }
 0x1ca   :  { %1784 = vmatmul.msk.bf16.vlgmr.msrb.gmra.mxu0 %vm352_vm10, %v1882_v49  ;;  %v831_v49 = vpop.permute.xlu0 %830 }
 0x1da   :  { %1785 = vmatmul.msk.bf16.gmra.mxu0 %vm352_vm10, %v1883_v50 }
 0x1ea   :  { %1786 = vmatmul.msk.bf16.gmra.mxu0 %vm352_vm10, %v1884_v54  ;;  %v2675_v54 = vld [vmem:[%s2959_s13 + $0x10] sm:$0xff] }
 0x1fa   :  { %1787 = vmatmul.msk.bf16.gmra.mxu0 %vm352_vm10, %v1885_v55 }
 0x227   :  { %v334_v58 = vpop.f32.mrf.mxu0 }
 0x228   :  { %v2559_v59 = vadd.f32 %v334_v58, %v291_v57  ;;  %v836_v58 = vpop.permute.xlu2 %835 }
 0x22a   :  { %1734 = vmatmul.msk.f32.vlgmr.msra.gmra.mxu1 %vm352_vm10, %v2559_v59  ;;  %v394_v60 = vmul.f32 %v2559_v59, %v2559_v59 }
 0x22c   :  { %1738 = vmatmul.msk.f32.vlgmr.msra.gmra.mxu2 %vm352_vm10, %v394_v60 }
 0x22d   :  { %1793 = vmatpush.msk.msra.mxu2 %vm634_vm11, %v2597_v22 }
 0x22f   :  { %v336_v62 = vpop.f32.mrf.mxu0 }
 0x230   :  { %v2566_v63 = vadd.f32 %v336_v62, %v296_v61  ;;  %v2682_v61 = vld [vmem:[%s2959_s13 + $0x18] sm:$0xff] }
 0x232   :  { %1735 = vmatmul.msk.f32.gmra.mxu1 %vm352_vm10, %v2566_v63  ;;  %v395_v2 = vmul.f32 %v2566_v63, %v2566_v63 }
 0x234   :  { %1739 = vmatmul.msk.f32.gmra.mxu2 %vm352_vm10, %v395_v2 }
 0x237   :  { %v339_v5 = vpop.f32.mrf.mxu0 }
 0x238   :  { %v2573_v6 = vadd.f32 %v339_v5, %v301_v3 }
 0x23a   :  { %1736 = vmatmul.msk.f32.gmra.mxu1 %vm352_vm10, %v2573_v6  ;;  %v396_v7 = vmul.f32 %v2573_v6, %v2573_v6 }
 0x23c   :  { %1740 = vmatmul.msk.f32.gmra.mxu2 %vm352_vm10, %v396_v7 }
 0x23f   :  { %v341_v9 = vpop.f32.mrf.mxu0 }
 0x240   :  { %v2580_v10 = vadd.f32 %v341_v9, %v306_v8 }
 0x242   :  { %1737 = vmatmul.msk.f32.gmra.mxu1 %vm352_vm10, %v2580_v10  ;;  %v397_v11 = vmul.f32 %v2580_v10, %v2580_v10 }
 0x244   :  { %1741 = vmatmul.msk.f32.gmra.mxu2 %vm352_vm10, %v397_v11 }
 0x247   :  { %v899_v26 = vpop.f32.mrf.mxu0 }
 0x248   :  { %v900_v39 = vadd.f32 %v899_v26, %v821_v35 }
 0x24a   :  { %v923_v42 = vmul.f32 %v2657_v40, %v900_v39 }
 0x24f   :  { %v901_v41 = vpop.f32.mrf.mxu0 }
 0x250   :  { %v902_v37 = vadd.f32 %v901_v41, %v826_v44 }
 0x252   :  { %v924_v47 = vmul.f32 %v2666_v38, %v902_v37 }
 0x257   :  { %v904_v45 = vpop.f32.mrf.mxu0 }
 0x258   :  { %v905_v50 = vadd.f32 %v904_v45, %v831_v49 }
 0x25a   :  { %v925_v55 = vmul.f32 %v2675_v54, %v905_v50 }
 0x25f   :  { %v906_v57 = vpop.f32.mrf.mxu0 }
 0x260   :  { %v907_v60 = vadd.f32 %v906_v57, %v836_v58 }
 0x262   :  { %v926_v62 = vmul.f32 %v2682_v61, %v907_v60 }
 0x2a7   :  { %v382_v12 = vpop.f32.mrf.mxu1 }
 0x2af   :  { %v385_v13 = vpop.f32.mrf.mxu1  ;;  %v427_v14 = vpop.f32.mrf.mxu2 }
 0x2b7   :  { %v388_v16 = vpop.f32.mrf.mxu1  ;;  %v430_v17 = vpop.f32.mrf.mxu2 }
 0x2bf   :  { %v391_v18 = vpop.f32.mrf.mxu1  ;;  %v433_v19 = vpop.f32.mrf.mxu2 }
 0x2c0   :  { %463 = vmatpush.msra.mxu3 %v391_v18 }
 0x2c2   :  { %464 = vmatpush.msra.mxu3 %v388_v16 }
 0x2c4   :  { %465 = vmatpush.msra.mxu3 %v385_v13 }
 0x2c6   :  { %466 = vmatpush.msra.mxu3 %v382_v12 }
 0x2c7   :  { %v436_v21 = vpop.f32.mrf.mxu2  ;;  %1742 = vmatmul.msk.f32.vlgmr.msra.gmra.mxu3 %vm352_vm10, %v2590_v20 }
 0x2c8   :  { %496 = vmatpush.msrb.mxu1 %v436_v21  ;;  %1755 = vmatpush.msk.msrb.mxu3 %vm634_vm11, %v2597_v22 }
 0x2ca   :  { %497 = vmatpush.msrb.mxu1 %v433_v19 }
 0x2cc   :  { %498 = vmatpush.msrb.mxu1 %v430_v17 }
 0x2ce   :  { %499 = vmatpush.msrb.mxu1 %v427_v14 }
 0x2cf   :  { %1743 = vmatmul.msk.f32.gmra.mxu3 %vm352_vm10, %v2610_v24  ;;  %1746 = vmatmul.msk.f32.vlgmr.msrb.gmra.mxu1 %vm352_vm10, %v2590_v20 }
 0x2d0   :  { %1788 = vmatpush.msk.msra.mxu1 %vm634_vm11, %v2597_v22 }
 0x2d7   :  { %1744 = vmatmul.msk.f32.gmra.mxu3 %vm352_vm10, %v2627_v1  ;;  %1747 = vmatmul.msk.f32.gmra.mxu1 %vm352_vm10, %v2610_v24 }
 0x2df   :  { %1745 = vmatmul.msk.f32.gmra.mxu3 %vm352_vm10, %v2640_v31  ;;  %1748 = vmatmul.msk.f32.gmra.mxu1 %vm352_vm10, %v2627_v1 }
 0x2e7   :  { %1749 = vmatmul.msk.f32.gmra.mxu1 %vm352_vm10, %v2640_v31 }
 0x2ef   :  { %1789 = vmatmul.msk.f32.vlgmr.msra.gmra.mxu1 %vm621_vm12, %v923_v42 }
 0x2f7   :  { %1790 = vmatmul.msk.f32.gmra.mxu1 %vm621_vm12, %v924_v47 }
 0x2ff   :  { %1791 = vmatmul.msk.f32.gmra.mxu1 %vm621_vm12, %v925_v55 }
 0x307   :  { %1792 = vmatmul.msk.f32.gmra.mxu1 %vm621_vm12, %v926_v62 }
 0x34a   :  { %v468_v2 = vpop.f32.mrf.mxu3 }
 0x34b   :  { %v480_v3 = vmul.f32 0.015625, %v468_v2 }
 0x34c   :  { %v501_v5 = vpop.f32.mrf.mxu1 }
 0x34d   :  { %v517_v7 = vmul.f32 %v480_v3, %v480_v3  ;;  %v513_v8 = vmul.f32 0.015625, %v501_v5 }
 0x34f   :  { %v521_v9 = vsub.f32 %v513_v8, %v517_v7 }
 0x351   :  { %v525_v11 = vadd.f32 1e-05, %v521_v9 }
 0x352   :  { %v471_v12 = vpop.f32.mrf.mxu3 }
 0x353   :  { %2022 = vrsqrt.f32 %v525_v11  ;;  %v481_v13 = vmul.f32 0.015625, %v471_v12  ;;  %vm535_vm14 = vweird.f32 %v525_v11 }
 0x354   :  { %v504_v14 = vpop.f32.mrf.mxu1 }
 0x355   :  { %v518_v16 = vmul.f32 %v481_v13, %v481_v13  ;;  %v514_v17 = vmul.f32 0.015625, %v504_v14 }
 0x357   :  { %v522_v18 = vsub.f32 %v514_v17, %v518_v16 }
 0x359   :  { %v2023_v19 = vpop.eup %2022  ;;  %v526_v21 = vadd.f32 1e-05, %v522_v18 }
 0x35a   :  { %v530_v26 = vmul.f32 %v2023_v19, %v525_v11  ;;  %v474_v35 = vpop.f32.mrf.mxu3  ;;  %vm536_vm13 = vweird.f32 %v2023_v19 }
 0x35b   :  { %2024 = vrsqrt.f32 %v526_v21  ;;  %v2686_v39 = vmul.f32 0.015625, %v474_v35  ;;  %vm537_vm15 = vmor %vm535_vm14, %vm536_vm13  ;;  %vm545_vm3 = vweird.f32 %v526_v21 }
 0x35c   :  { %v531_v41 = vmul.f32 %v2023_v19, %v530_v26  ;;  %v507_v42 = vpop.f32.mrf.mxu1 }
 0x35d   :  { %v519_v44 = vmul.f32 %v2686_v39, %v2686_v39  ;;  %v515_v37 = vmul.f32 0.015625, %v507_v42 }
 0x35e   :  { %v532_v45 = vmul.f32 0.5, %v531_v41 }
 0x35f   :  { %v523_v47 = vsub.f32 %v515_v37, %v519_v44 }
 0x360   :  { %v533_v49 = vsub.f32 1.5, %v532_v45 }
 0x361   :  { %v2025_v50 = vpop.eup %2024  ;;  %v527_v55 = vadd.f32 1e-05, %v523_v47 }
 0x362   :  { %v534_v57 = vmul.f32 %v2023_v19, %v533_v49  ;;  %v540_v58 = vmul.f32 %v2025_v50, %v526_v21  ;;  %v477_v60 = vpop.f32.mrf.mxu3  ;;  %vm546_vm1 = vweird.f32 %v2025_v50 }
 0x363   :  { %2026 = vrsqrt.f32 %v527_v55  ;;  %v483_v62 = vmul.f32 0.015625, %v477_v60  ;;  %vm547_vm5 = vmor %vm545_vm3, %vm546_vm1  ;;  %vm555_vm9 = vweird.f32 %v527_v55 }
 0x364   :  { %v541_v2 = vmul.f32 %v2025_v50, %v540_v58  ;;  %v510_v5 = vpop.f32.mrf.mxu1  ;;  %v538_v7 = vsel %vm537_vm15, %v2023_v19, %v534_v57 }
 0x365   :  { %v520_v8 = vmul.f32 %v483_v62, %v483_v62  ;;  %v516_v9 = vmul.f32 0.015625, %v510_v5  ;;  %v589_v12 = vmul.f32 %v2605_v23, %v538_v7 }
 0x366   :  { %v542_v14 = vmul.f32 0.5, %v541_v2 }
 0x367   :  { %v524_v16 = vsub.f32 %v516_v9, %v520_v8  ;;  %1751 = vmatmul.msk.f32.vlgmr.msrb.gmra.mxu2 %vm621_vm12, %v589_v12  ;;  %v593_v17 = vmul.f32 %v589_v12, %v480_v3 }
 0x368   :  { %v543_v18 = vsub.f32 1.5, %v542_v14  ;;  %1269 = vmatpush.msrb.mxu2 %v2526_v51 }
 0x369   :  { %v2027_v11 = vpop.eup %2026  ;;  %v528_v26 = vadd.f32 1e-05, %v524_v16  ;;  %v617_v35 = vsub.f32 %v2616_v25, %v593_v17 }
 0x36a   :  { %v550_v41 = vmul.f32 %v2027_v11, %v527_v55  ;;  %v544_v19 = vmul.f32 %v2025_v50, %v543_v18  ;;  %1270 = vmatpush.msrb.mxu2 %v2531_v52  ;;  %vm556_vm7 = vweird.f32 %v2027_v11  ;;  %v933_v18 = vld [vmem:[%s2960_s28 + $0x10] sm:$0xff] }
 0x36b   :  { %2028 = vrsqrt.f32 %v528_v26  ;;  %1756 = vmatmul.msk.f32.vlgmr.msrb.gmra.mxu3 %vm621_vm12, %v617_v35  ;;  %vm557_vm13 = vmor %vm555_vm9, %vm556_vm7  ;;  %vm565_vm15 = vweird.f32 %v528_v26 }
 0x36c   :  { %v551_v23 = vmul.f32 %v2027_v11, %v550_v41  ;;  %v548_v42 = vsel %vm547_vm5, %v2025_v50, %v544_v19  ;;  %1271 = vmatpush.msrb.mxu2 %v2538_v53  ;;  %v909_v50 = vpop.f32.mrf.mxu0 }
 0x36d   :  { %v590_v3 = vmul.f32 %v2620_v29, %v548_v42  ;;  %v910_v7 = vadd.f32 %v909_v50, %v2650_v34 }
 0x36e   :  { %v552_v44 = vmul.f32 0.5, %v551_v23  ;;  %1272 = vmatpush.msrb.mxu2 %v2555_v56 }
 0x36f   :  { %1752 = vmatmul.msk.f32.gmra.mxu2 %vm621_vm12, %v590_v3  ;;  %v594_v25 = vmul.f32 %v590_v3, %v481_v13 }
 0x370   :  { %v553_v21 = vsub.f32 1.5, %v552_v44 }
 0x371   :  { %v2029_v37 = vpop.eup %2028  ;;  %v618_v45 = vsub.f32 %v2622_v0, %v594_v25 }
 0x372   :  { %v560_v47 = vmul.f32 %v2029_v37, %v528_v26  ;;  %v554_v49 = vmul.f32 %v2027_v11, %v553_v21  ;;  %vm566_vm14 = vweird.f32 %v2029_v37 }
 0x373   :  { %1757 = vmatmul.msk.f32.gmra.mxu3 %vm621_vm12, %v618_v45  ;;  %vm567_vm1 = vmor %vm565_vm15, %vm566_vm14 }
 0x374   :  { %v561_v57 = vmul.f32 %v2029_v37, %v560_v47  ;;  %v558_v29 = vsel %vm557_vm13, %v2027_v11, %v554_v49  ;;  %v856_v11 = vpop.permute.xlu1 %855 }
 0x375   :  { %v591_v58 = vmul.f32 %v2633_v27, %v558_v29  ;;  %v911_v27 = vpop.f32.mrf.mxu0 }
 0x376   :  { %v562_v60 = vmul.f32 0.5, %v561_v57  ;;  %v912_v16 = vadd.f32 %v911_v27, %v2660_v43 }
 0x377   :  { %1753 = vmatmul.msk.f32.gmra.mxu2 %vm621_vm12, %v591_v58  ;;  %v595_v13 = vmul.f32 %v591_v58, %v2686_v39  ;;  %v927_v39 = vmul.f32 %v2657_v40, %v910_v7  ;;  %v968_v7 = vpop.f32.mrf.mxu1 }
 0x378   :  { %v563_v2 = vsub.f32 1.5, %v562_v60  ;;  %v928_v34 = vmul.f32 %v2666_v38, %v912_v16 }
 0x379   :  { %v619_v0 = vsub.f32 %v2635_v28, %v595_v13  ;;  %v931_v28 = vld [vmem:[%s2960_s28] sm:$0xff] }
 0x37a   :  { %v564_v55 = vmul.f32 %v2029_v37, %v563_v2  ;;  %v935_v14 = vadd.f32 %v931_v28, %v927_v39 }
 0x37b   :  { %1758 = vmatmul.msk.f32.gmra.mxu3 %vm621_vm12, %v619_v0 }
 0x37c   :  { %v568_v5 = vsel %vm567_vm1, %v2029_v37, %v564_v55 }
 0x37d   :  { %v592_v8 = vmul.f32 %v2642_v32, %v568_v5  ;;  %v914_v32 = vpop.f32.mrf.mxu0 }
 0x37e   :  { %v915_v40 = vadd.f32 %v914_v32, %v2669_v48  ;;  %v934_v48 = vld [vmem:[%s2960_s28 + $0x18] sm:$0xff] }
 0x37f   :  { %1754 = vmatmul.msk.f32.gmra.mxu2 %vm621_vm12, %v592_v8  ;;  %v596_v9 = vmul.f32 %v592_v8, %v483_v62 }
 0x380   :  { %v929_v17 = vmul.f32 %v2675_v54, %v915_v40 }
 0x381   :  { %v620_v12 = vsub.f32 %v2648_v33, %v596_v9  ;;  %v932_v33 = vld [vmem:[%s2960_s28 + $0x8] sm:$0xff] }
 0x382   :  { %v936_v62 = vadd.f32 %v932_v33, %v928_v34  ;;  %v937_v35 = vadd.f32 %v933_v18, %v929_v17 }
 0x383   :  { %1759 = vmatmul.msk.f32.gmra.mxu3 %vm621_vm12, %v620_v12 }
 0x385   :  { %v916_v43 = vpop.f32.mrf.mxu0 }
 0x386   :  { %v917_v26 = vadd.f32 %v916_v43, %v856_v11  ;;  %v971_v43 = vpop.f32.mrf.mxu1 }
 0x387   :  { %1794 = vmatmul.msk.f32.vlgmr.msra.gmra.mxu2 %vm621_vm12, %v935_v14 }
 0x388   :  { %1856 = vmatpush.msk.msra.mxu2 %vm634_vm11, %v2597_v22  ;;  %v930_v38 = vmul.f32 %v2682_v61, %v917_v26 }
 0x38a   :  { %v938_v41 = vadd.f32 %v934_v48, %v930_v38 }
 0x38f   :  { %1795 = vmatmul.msk.f32.gmra.mxu2 %vm621_vm12, %v936_v62 }
 0x397   :  { %1796 = vmatmul.msk.f32.gmra.mxu2 %vm621_vm12, %v937_v35 }
 0x39f   :  { %1797 = vmatmul.msk.f32.gmra.mxu2 %vm621_vm12, %v938_v41 }
 0x3ea   :  { %v655_v54 = vpop.f32.mrf.mxu2 }
 0x3eb   :  { %v708_v19 = vmul.f32 %v655_v54, %v2559_v59 }
 0x3ee   :  { %v696_v23 = vpop.f32.mrf.mxu3 }
 0x3ef   :  { %v712_v42 = vadd.f32 %v708_v19, %v696_v23 }
 0x3f1   :  { %v716_v3 = vmin.f32 %v712_v42, 20.0 }
 0x3f2   :  { %v658_v44 = vpop.f32.mrf.mxu2 }
 0x3f3   :  { %v720_v25 = vmul.f32 1.442695, %v716_v3  ;;  %v709_v21 = vmul.f32 %v658_v44, %v2566_v63 }
 0x3f5   :  { %2030 = vpow2.f32 %v720_v25 }
 0x3f6   :  { %v699_v37 = vpop.f32.mrf.mxu3 }
 0x3f7   :  { %v713_v61 = vadd.f32 %v709_v21, %v699_v37  ;;  %v974_v21 = vpop.f32.mrf.mxu1 }
 0x3f9   :  { %v717_v45 = vmin.f32 %v713_v61, 20.0 }
 0x3fa   :  { %v661_v47 = vpop.f32.mrf.mxu2 }
 0x3fb   :  { %v2031_v49 = vpop.eup %2030  ;;  %v722_v50 = vmul.f32 1.442695, %v717_v45  ;;  %v710_v29 = vmul.f32 %v661_v47, %v2573_v6 }
 0x3fc   :  { %v728_v57 = vadd.f32 1.0, %v2031_v49 }
 0x3fd   :  { %2032 = vpow2.f32 %v722_v50 }
 0x3fe   :  { %v732_v58 = vmul.f32 %v728_v57, %v728_v57  ;;  %v702_v59 = vpop.f32.mrf.mxu3 }
 0x3ff   :  { %v714_v60 = vadd.f32 %v710_v29, %v702_v59 }
 0x400   :  { %v744_v13 = vadd.f32 1.0, %v732_v58  ;;  %v1760_v39 = vadd.f32 -1.0, %v732_v58 }
 0x401   :  { %v718_v2 = vmin.f32 %v714_v60, 20.0 }
 0x402   :  { %v664_v0 = vpop.f32.mrf.mxu2  ;;  %2034 = vrcp.f32 %v744_v13  ;;  %v740_v34 = vmul.f32 %v1760_v39, %v712_v42  ;;  %v977_v13 = vpop.f32.mrf.mxu1 }
 0x403   :  { %v2033_v55 = vpop.eup %2032  ;;  %v724_v5 = vmul.f32 1.442695, %v718_v2  ;;  %v711_v8 = vmul.f32 %v664_v0, %v2580_v10 }
 0x404   :  { %v729_v63 = vadd.f32 1.0, %v2033_v55 }
 0x405   :  { %2036 = vpow2.f32 %v724_v5 }
 0x406   :  { %v733_v27 = vmul.f32 %v729_v63, %v729_v63  ;;  %v705_v9 = vpop.f32.mrf.mxu3 }
 0x407   :  { %v715_v12 = vadd.f32 %v711_v8, %v705_v9 }
 0x408   :  { %v745_v28 = vadd.f32 1.0, %v733_v27  ;;  %v2035_v14 = vpop.eup %2034  ;;  %v1761_v33 = vadd.f32 -1.0, %v733_v27 }
 0x409   :  { %v719_v6 = vmin.f32 %v715_v12, 20.0  ;;  %v752_v17 = vmul.f32 %v2035_v14, %v740_v34 }
 0x40a   :  { %2038 = vrcp.f32 %v745_v28  ;;  %v1013_v16 = vpop.f32.mrf.mxu2  ;;  %v741_v11 = vmul.f32 %v1761_v33, %v713_v61 }
 0x40b   :  { %v2037_v32 = vpop.eup %2036  ;;  %v726_v40 = vmul.f32 1.442695, %v719_v6  ;;  %v980_v35 = vmul.f32 %v968_v7, %v752_v17 }
 0x40c   :  { %v730_v62 = vadd.f32 1.0, %v2037_v32 }
 0x40d   :  { %2040 = vpow2.f32 %v726_v40  ;;  %v2740_v23 = vadd.f32 %v1013_v16, %v980_v35 }
 0x40e   :  { %v734_v18 = vmul.f32 %v730_v62, %v730_v62 }
 0x410   :  { %v2039_v10 = vpop.eup %2038  ;;  %v746_v26 = vadd.f32 1.0, %v734_v18  ;;  %v1762_v44 = vadd.f32 -1.0, %v734_v18 }
 0x411   :  { %v753_v38 = vmul.f32 %v2039_v10, %v741_v11 }
 0x412   :  { %v1016_v48 = vpop.f32.mrf.mxu2  ;;  %2042 = vrcp.f32 %v746_v26  ;;  %v742_v47 = vmul.f32 %v1762_v44, %v714_v60  ;;  %v1237_v44 = vld [vmem:[#allocation12] sm:$0xff] }
 0x413   :  { %v2041_v41 = vpop.eup %2040  ;;  %v981_v54 = vmul.f32 %v971_v43, %v753_v38 }
 0x414   :  { %v731_v19 = vadd.f32 1.0, %v2041_v41  ;;  %v1128_v41 = vld [vmem:[#allocation10 + $0x18] sm:$0xff] }
 0x415   :  { %v2742_v42 = vadd.f32 %v1016_v48, %v981_v54  ;;  %v1125_v48 = vld [vmem:[#allocation10] sm:$0xff]  ;;  %v1126_v54 = vld [vmem:[#allocation10 + $0x8] sm:$0xff] }
 0x416   :  { %v735_v3 = vmul.f32 %v731_v19, %v731_v19  ;;  %v1127_v19 = vld [vmem:[#allocation10 + $0x10] sm:$0xff] }
 0x417   :  { %v1951_v25 = vpack.i.bf16 %v2742_v42, %v2740_v23 }
 0x418   :  { %v747_v37 = vadd.f32 1.0, %v735_v3  ;;  %v2043_v61 = vpop.eup %2042  ;;  %v1763_v49 = vadd.f32 -1.0, %v735_v3  ;;  %v1238_v3 = vld [vmem:[#allocation12 + $0x8] sm:$0xff] }
 0x419   :  { %1952 = vrot.lane.b32.xlu1 %v1951_v25, %s2257_s24  ;;  %v754_v50 = vmul.f32 %v2043_v61, %v742_v47  ;;  %v1241_v25 = vld [vmem:[%s2932_s11] sm:$0xff]  ;;  %v1240_v47 = vld [vmem:[#allocation12 + $0x18] sm:$0xff] }
 0x41a   :  { %2044 = vrcp.f32 %v747_v37  ;;  %v1019_v45 = vpop.f32.mrf.mxu2  ;;  %v743_v57 = vmul.f32 %v1763_v49, %v715_v12  ;;  %v1242_v37 = vld [vmem:[%s2932_s11 + $0x8] sm:$0xff]  ;;  %v1239_v61 = vld [vmem:[#allocation12 + $0x10] sm:$0xff]  ;;  %v1244_v49 = vld [vmem:[%s2932_s11 + $0x18] sm:$0xff] }
 0x41b   :  { %v982_v58 = vmul.f32 %v974_v21, %v754_v50  ;;  %v1243_v21 = vld [vmem:[%s2932_s11 + $0x10] sm:$0xff]  ;;  %v1639_v50 = vld [vmem:[%s2936_s15 + $0x18] sm:$0xff] }
 0x41d   :  { %v2747_v55 = vadd.f32 %v1019_v45, %v982_v58  ;;  %v1636_v45 = vld [vmem:[%s2936_s15] sm:$0xff] }
 0x420   :  { %v2045_v29 = vpop.eup %2044 }
 0x421   :  { %v755_v59 = vmul.f32 %v2045_v29, %v743_v57  ;;  %v1637_v57 = vld [vmem:[%s2936_s15 + $0x8] sm:$0xff]  ;;  %v1638_v29 = vld [vmem:[%s2936_s15 + $0x10] sm:$0xff] }
 0x422   :  { %v1022_v0 = vpop.f32.mrf.mxu2 }
 0x423   :  { %v983_v2 = vmul.f32 %v977_v13, %v755_v59 }
 0x425   :  { %v2749_v5 = vadd.f32 %v1022_v0, %v983_v2 }
 0x427   :  { %v1946_v7 = vpack.i.bf16 %v2749_v5, %v2747_v55 }
 0x429   :  { %1947 = vrot.lane.b32.xlu0 %v1946_v7, %s2257_s24 }
 0x48b   :  { %v1953_v63 = vpop.permute.xlu1 %1952 }
 0x48c   :  { %v1955_v60 = vunpack.i.h.bf16 %v1953_v63  ;;  %v1954_v8 = vunpack.i.l.bf16 %v1953_v63 }
 0x48e   :  { %v1031_v27 = vsel %vm197_vm0, %v1954_v8, %v2740_v23  ;;  %v1034_v9 = vsel %vm197_vm0, %v1955_v60, %v2742_v42 }
 0x48f   :  { %v1961_v39 = vpack.i.bf16 %v1034_v9, %v1031_v27  ;;  %v1134_v9 = vpack.c.bf16 %v2749_v5, %v2747_v55 }
 0x491   :  { %1962 = vrot.lane.b32.xlu0 %v1961_v39, %s2257_s24 }
 0x49b   :  { %v1948_v12 = vpop.permute.xlu0 %1947 }
 0x49c   :  { %v1950_v28 = vunpack.i.h.bf16 %v1948_v12  ;;  %v1949_v6 = vunpack.i.l.bf16 %v1948_v12 }
 0x49e   :  { %v1037_v14 = vsel %vm197_vm0, %v1949_v6, %v2747_v55  ;;  %v1040_v16 = vsel %vm197_vm0, %v1950_v28, %v2749_v5 }
 0x49f   :  { %v1956_v32 = vpack.i.bf16 %v1040_v16, %v1037_v14  ;;  %v1133_v14 = vpack.c.bf16 %v2742_v42, %v2740_v23 }
 0x4a1   :  { %1957 = vrot.lane.b32.xlu2 %v1956_v32, %s2257_s24 }
 0x4fb   :  { %v1958_v34 = vpop.permute.xlu2 %1957 }
 0x4fc   :  { %v1960_v33 = vunpack.i.h.bf16 %v1958_v34  ;;  %v1959_v40 = vunpack.i.l.bf16 %v1958_v34 }
 0x4fe   :  { %v1052_v62 = vsel %vm197_vm0, %v1960_v33, %v2749_v5  ;;  %v1051_v17 = vsel %vm197_vm0, %v1959_v40, %v2747_v55  ;;  %v1826_v55 = vld [vmem:[#allocation9 + $0x4] sm:$0xf]  ;;  %v1888_v5 = vld [vmem:[#allocation9 + $0x8] sm:$0xf0] }
 0x4ff   :  { %v1976_v43 = vpack.i.bf16 %v1052_v62, %v1051_v17 }
 0x501   :  { %1977 = vrot.lane.b32.xlu0 %v1976_v43, %s2258_s25  ;;  %1967 = vrot.lane.b32.xlu1 %v1976_v43, %s2261_s3 }
 0x503   :  { %v1963_v18 = vpop.permute.xlu0 %1962 }
 0x504   :  { %v1965_v11 = vunpack.i.h.bf16 %v1963_v18  ;;  %v1964_v10 = vunpack.i.l.bf16 %v1963_v18 }
 0x506   :  { %v1050_v26 = vsel %vm197_vm0, %v1965_v11, %v2742_v42  ;;  %v1049_v35 = vsel %vm197_vm0, %v1964_v10, %v2740_v23  ;;  %vm1670_vm0 = vcmask 130048  }
 0x507   :  { %v1971_v38 = vpack.i.bf16 %v1050_v26, %v1049_v35  ;;  %v1827_v26 = vor.u32 %v1888_v5, %v1826_v55 }
 0x509   :  { %1972 = vrot.lane.b32.xlu2 %v1971_v38, %s2261_s3  ;;  %1992 = vrot.lane.b32.xlu0 %v1971_v38, %s2260_s23 }
 0x50a   :  { %1982 = vrot.lane.b32.xlu1 %v1971_v38, %s2258_s25 }
 0x511   :  { %1987 = vrot.lane.b32.xlu2 %v1976_v43, %s2260_s23  ;;  %1143 = vperm.xlu0 %1943, %v1125_v48  }
 0x512   :  { %1997 = vrot.lane.b32.xlu1 %v1976_v43, %s2259_s2 }
 0x519   :  { %2002 = vrot.lane.b32.xlu2 %v1971_v38, %s2259_s2  ;;  %1158 = vperm.xlu0 %1943, %v1128_v41   ;;  %v1800_v41 = vld [vmem:[#allocation9] sm:$0xf] }
 0x51a   :  { %1148 = vperm.xlu1 %1944, %v1126_v54   ;;  %v1886_v54 = vld [vmem:[#allocation9 + $0x4] sm:$0xf0] }
 0x521   :  { %1153 = vperm.xlu2 %1945, %v1127_v19   ;;  %1456 = vperm.xlu0 %1943, %v1238_v3   ;;  %v1801_v3 = vor.u32 %v1886_v54, %v1800_v41 }
 0x522   :  { %1451 = vperm.xlu1 %1944, %v1237_v44   ;;  %v1831_v44 = vor.u32 %v1889_v30, %v1830_v46 }
 0x529   :  { %1479 = vperm.xlu2 %1945, %v1241_v25   ;;  %1489 = vperm.xlu0 %1943, %v1243_v21   ;;  %v1804_v25 = vld [vmem:[#allocation9 + $0x10] sm:$0xf] }
 0x52a   :  { %1484 = vperm.xlu1 %1944, %v1242_v37   ;;  %v1805_v21 = vor.u32 %v1887_v36, %v1804_v25 }
 0x531   :  { %1461 = vperm.xlu2 %1945, %v1239_v61   ;;  %1642 = vperm.xlu0 %1943, %v1636_v45  }
 0x532   :  { %1466 = vperm.xlu1 %1944, %v1240_v47  }
 0x539   :  { %1494 = vperm.xlu2 %1945, %v1244_v49   ;;  %1657 = vperm.xlu0 %1943, %v1639_v50  }
 0x53a   :  { %1647 = vperm.xlu1 %1944, %v1637_v57  }
 0x541   :  { %1652 = vperm.xlu2 %1945, %v1638_v29  }
 0x563   :  { %v1973_v58 = vpop.permute.xlu2 %1972 }
 0x564   :  { %v1975_v0 = vunpack.i.h.bf16 %v1973_v58  ;;  %v1974_v7 = vunpack.i.l.bf16 %v1973_v58 }
 0x566   :  { %v1810_v8 = vpack.c.bf16 %v1975_v0, %v1974_v7 }
 0x56b   :  { %v1988_v60 = vpop.permute.xlu2 %1987 }
 0x56c   :  { %v1990_v18 = vunpack.i.h.bf16 %v1988_v60  ;;  %v1989_v23 = vunpack.i.l.bf16 %v1988_v60 }
 0x56e   :  { %v1819_v35 = vpack.c.bf16 %v1990_v18, %v1989_v23 }
 0x573   :  { %v1968_v59 = vpop.permute.xlu1 %1967  ;;  %v1978_v39 = vpop.permute.xlu0 %1977 }
 0x574   :  { %v1970_v13 = vunpack.i.h.bf16 %v1968_v59  ;;  %v1969_v2 = vunpack.i.l.bf16 %v1968_v59  ;;  %v2003_v12 = vpop.permute.xlu2 %2002  ;;  %v1980_v28 = vunpack.i.h.bf16 %v1978_v39  ;;  %v1979_v6 = vunpack.i.l.bf16 %v1978_v39 }
 0x575   :  { %v2005_v33 = vunpack.i.h.bf16 %v2003_v12  ;;  %v2004_v40 = vunpack.i.l.bf16 %v2003_v12 }
 0x576   :  { %v1807_v63 = vpack.c.bf16 %v1970_v13, %v1969_v2  ;;  %v1813_v62 = vpack.c.bf16 %v1980_v28, %v1979_v6 }
 0x577   :  { %v1836_v42 = vpack.c.bf16 %v2005_v33, %v2004_v40  ;;  %v1890_v33 = vld [vmem:[%s2935_s14] sm:$0xff] }
 0x578   :  { %1808 = vmatpush.bf16.msk.msra.mxu3 %vm2474_vm4, %v1807_v63 }
 0x57b   :  { %v1993_v10 = vpop.permute.xlu0 %1992 }
 0x57c   :  { %v1983_v27 = vpop.permute.xlu1 %1982  ;;  %1811 = vmatpush.bf16.msk.msra.mxu3 %vm2474_vm4, %v1810_v8  ;;  %v1995_v38 = vunpack.i.h.bf16 %v1993_v10  ;;  %v1994_v48 = vunpack.i.l.bf16 %v1993_v10  ;;  %v1154_v29 = vpop.permute.xlu2 %1153 }
 0x57d   :  { %v1985_v4 = vunpack.i.h.bf16 %v1983_v27  ;;  %v1984_v17 = vunpack.i.l.bf16 %v1983_v27 }
 0x57e   :  { %v1822_v19 = vpack.c.bf16 %v1995_v38, %v1994_v48 }
 0x57f   :  { %v1816_v11 = vpack.c.bf16 %v1985_v4, %v1984_v17 }
 0x580   :  { %1175 = vmatpush.bf16.msra.mxu3 %v1134_v9 }
 0x583   :  { %v1144_v37 = vpop.permute.xlu0 %1143 }
 0x584   :  { %v1998_v16 = vpop.permute.xlu1 %1997  ;;  %1176 = vmatpush.bf16.msra.mxu3 %v1133_v14 }
 0x585   :  { %v2000_v32 = vunpack.i.h.bf16 %v1998_v16  ;;  %v1999_v34 = vunpack.i.l.bf16 %v1998_v16 }
 0x587   :  { %v1833_v43 = vpack.c.bf16 %v2000_v32, %v1999_v34 }
 0x588   :  { %1814 = vmatpush.bf16.msk.msra.mxu3 %vm2492_vm6, %v1813_v62 }
 0x589   :  { %1834 = vmatpush.bf16.msk.msrb.mxu1 %vm2461_vm2, %v1833_v43 }
 0x58b   :  { %v1159_v7 = vpop.permute.xlu0 %1158 }
 0x58c   :  { %1817 = vmatpush.bf16.msk.msra.mxu3 %vm2492_vm6, %v1816_v11 }
 0x58d   :  { %1837 = vmatpush.bf16.msk.msrb.mxu1 %vm2461_vm2, %v1836_v42 }
 0x590   :  { %1838 = vmatmul.msk.bf16.vlgmr.msrb.gmra.mxu1 %vm352_vm10, %v1827_v26  ;;  %1820 = vmatpush.bf16.msk.msra.mxu3 %vm2500_vm8, %v1819_v35 }
 0x594   :  { %1823 = vmatpush.bf16.msk.msra.mxu3 %vm2500_vm8, %v1822_v19 }
 0x597   :  { %1181 = vmatmul.bf16.vlgmr.msra.gmra.mxu3 %v1801_v3 }
 0x598   :  { %1314 = vmatpush.msrb.mxu3 %v2526_v51 }
 0x59a   :  { %1315 = vmatpush.msrb.mxu3 %v2531_v52 }
 0x59c   :  { %1316 = vmatpush.msrb.mxu3 %v2538_v53 }
 0x59e   :  { %1317 = vmatpush.msrb.mxu3 %v2555_v56  ;;  %v1149_v56 = vpop.permute.xlu1 %1148 }
 0x5a0   :  { %1861 = vmatpush.msk.msra.mxu3 %vm634_vm11, %v2597_v22  ;;  %1839 = vmatmul.msk.bf16.gmra.mxu1 %vm352_vm10, %v1831_v44 }
 0x5a7   :  { %1186 = vmatmul.bf16.gmra.mxu3 %v1805_v21 }
 0x60d   :  { %v1223_v51 = vpop.f32.mrf.mxu1 }
 0x615   :  { %v1225_v53 = vpop.f32.mrf.mxu1 }
 0x61a   :  { %v1182_v61 = vpop.f32.mrf.mxu3 }
 0x61b   :  { %v1183_v45 = vadd.f32 %v1182_v61, %v1144_v37  ;;  %v1452_v37 = vpop.permute.xlu1 %1451 }
 0x61d   :  { %v2832_v47 = vadd.f32 %v1223_v51, %v1183_v45  ;;  %v1228_v58 = vpop.f32.mrf.mxu1 }
 0x61f   :  { %v1286_v52 = vmul.f32 %v2832_v47, %v2832_v47  ;;  %1840 = vmatmul.msk.f32.vlgmr.msrb.gmra.mxu2 %vm352_vm10, %v2832_v47 }
 0x621   :  { %1844 = vmatmul.msk.f32.vlgmr.msrb.gmra.mxu3 %vm352_vm10, %v1286_v52 }
 0x622   :  { %v1184_v22 = vpop.f32.mrf.mxu3 }
 0x623   :  { %v1185_v49 = vadd.f32 %v1184_v22, %v1149_v56 }
 0x625   :  { %v2839_v50 = vadd.f32 %v1225_v53, %v1185_v49  ;;  %v1230_v8 = vpop.f32.mrf.mxu1 }
 0x627   :  { %1841 = vmatmul.msk.f32.gmra.mxu2 %vm352_vm10, %v2839_v50  ;;  %v1287_v57 = vmul.f32 %v2839_v50, %v2839_v50 }
 0x629   :  { %1845 = vmatmul.msk.f32.gmra.mxu3 %vm352_vm10, %v1287_v57 }
 0x62a   :  { %v1187_v59 = vpop.f32.mrf.mxu3 }
 0x62b   :  { %v1188_v13 = vadd.f32 %v1187_v59, %v1154_v29 }
 0x62d   :  { %v2846_v2 = vadd.f32 %v1228_v58, %v1188_v13  ;;  %v1480_v58 = vpop.permute.xlu2 %1479 }
 0x62f   :  { %1842 = vmatmul.msk.f32.gmra.mxu2 %vm352_vm10, %v2846_v2  ;;  %v1288_v0 = vmul.f32 %v2846_v2, %v2846_v2 }
 0x631   :  { %1846 = vmatmul.msk.f32.gmra.mxu3 %vm352_vm10, %v1288_v0 }
 0x632   :  { %v1189_v63 = vpop.f32.mrf.mxu3 }
 0x633   :  { %v1190_v60 = vadd.f32 %v1189_v63, %v1159_v7 }
 0x635   :  { %v2853_v27 = vadd.f32 %v1230_v8, %v1190_v60  ;;  %v1457_v8 = vpop.permute.xlu0 %1456 }
 0x637   :  { %1843 = vmatmul.msk.f32.gmra.mxu2 %vm352_vm10, %v2853_v27  ;;  %v1289_v9 = vmul.f32 %v2853_v27, %v2853_v27 }
 0x639   :  { %1847 = vmatmul.msk.f32.gmra.mxu3 %vm352_vm10, %v1289_v9 }
 0x6a2   :  { %v1274_v39 = vpop.f32.mrf.mxu2 }
 0x6a4   :  { %v1319_v12 = vpop.f32.mrf.mxu3 }
 0x6aa   :  { %v1277_v28 = vpop.f32.mrf.mxu2 }
 0x6ac   :  { %v1322_v6 = vpop.f32.mrf.mxu3 }
 0x6b2   :  { %v1280_v14 = vpop.f32.mrf.mxu2 }
 0x6b4   :  { %v1325_v16 = vpop.f32.mrf.mxu3 }
 0x6ba   :  { %v1283_v32 = vpop.f32.mrf.mxu2 }
 0x6bb   :  { %1343 = vmatpush.msra.mxu0 %v1283_v32  ;;  %1892 = vmatpush.msra.mxu1 %v1283_v32 }
 0x6bc   :  { %v1328_v34 = vpop.f32.mrf.mxu3 }
 0x6bd   :  { %1344 = vmatpush.msra.mxu0 %v1280_v14  ;;  %1893 = vmatpush.msra.mxu1 %v1280_v14  ;;  %v1485_v14 = vpop.permute.xlu1 %1484 }
 0x6bf   :  { %1345 = vmatpush.msra.mxu0 %v1277_v28  ;;  %1894 = vmatpush.msra.mxu1 %v1277_v28 }
 0x6c1   :  { %1346 = vmatpush.msra.mxu0 %v1274_v39  ;;  %1895 = vmatpush.msra.mxu1 %v1274_v39 }
 0x6c2   :  { %1848 = vmatmul.msk.f32.vlgmr.msra.gmra.mxu0 %vm352_vm10, %v2590_v20  ;;  %1851 = vmatmul.msk.f32.vlgmr.msra.gmra.mxu1 %vm352_vm10, %v2640_v31 }
 0x6c3   :  { %1376 = vmatpush.msrb.mxu1 %v1328_v34  ;;  %1684 = vmatpush.bf16.msrb.mxu0 %v2486_v15  ;;  %v1891_v15 = vld [vmem:[%s2935_s14 + $0x8] sm:$0xff] }
 0x6c5   :  { %1377 = vmatpush.msrb.mxu1 %v1325_v16 }
 0x6c7   :  { %1378 = vmatpush.msrb.mxu1 %v1322_v6 }
 0x6c9   :  { %1379 = vmatpush.msrb.mxu1 %v1319_v12 }
 0x6ca   :  { %1849 = vmatmul.msk.f32.gmra.mxu0 %vm352_vm10, %v2610_v24  ;;  %1852 = vmatmul.msk.f32.vlgmr.msrb.gmra.mxu1 %vm352_vm10, %v2590_v20 }
 0x6d2   :  { %1850 = vmatmul.msk.f32.gmra.mxu0 %vm352_vm10, %v2627_v1  ;;  %1853 = vmatmul.msk.f32.gmra.mxu1 %vm352_vm10, %v2610_v24 }
 0x6da   :  { %1854 = vmatmul.msk.f32.gmra.mxu1 %vm352_vm10, %v2627_v1  ;;  %1878 = vmatmul.msk.bf16.vlgmr.msrb.gmra.mxu0 %vm1670_vm0, %v1890_v33 }
 0x6e2   :  { %1855 = vmatmul.msk.f32.gmra.mxu1 %vm352_vm10, %v2640_v31 }
 0x6ea   :  { %1879 = vmatmul.msk.bf16.gmra.mxu0 %vm1670_vm0, %v1891_v15 }
 0x73f   :  { %v1348_v20 = vpop.f32.mrf.mxu0  ;;  %v1357_v40 = vpop.f32.mrf.mxu1 }
 0x740   :  { %v1360_v24 = vmul.f32 0.015625, %v1348_v20  ;;  %v2887_v25 = vmul.f32 0.015625, %v1357_v40  ;;  %v1462_v20 = vpop.permute.xlu2 %1461 }
 0x742   :  { %v1397_v62 = vmul.f32 %v1360_v24, %v1360_v24  ;;  %v1400_v53 = vmul.f32 %v2887_v25, %v2887_v25 }
 0x747   :  { %v1351_v4 = vpop.f32.mrf.mxu0  ;;  %v1381_v17 = vpop.f32.mrf.mxu1 }
 0x748   :  { %v1393_v43 = vmul.f32 0.015625, %v1381_v17  ;;  %v1361_v55 = vmul.f32 0.015625, %v1351_v4 }
 0x74a   :  { %v1401_v5 = vsub.f32 %v1393_v43, %v1397_v62  ;;  %v1398_v1 = vmul.f32 %v1361_v55, %v1361_v55  ;;  %v1490_v43 = vpop.permute.xlu0 %1489 }
 0x74c   :  { %v1405_v18 = vadd.f32 1e-05, %v1401_v5 }
 0x74e   :  { %2046 = vrsqrt.f32 %v1405_v18  ;;  %vm1415_vm4 = vweird.f32 %v1405_v18 }
 0x74f   :  { %v1384_v23 = vpop.f32.mrf.mxu1  ;;  %v1354_v31 = vpop.f32.mrf.mxu0 }
 0x750   :  { %v1394_v42 = vmul.f32 0.015625, %v1384_v23  ;;  %v2883_v11 = vmul.f32 0.015625, %v1354_v31 }
 0x752   :  { %v1402_v10 = vsub.f32 %v1394_v42, %v1398_v1  ;;  %v1399_v48 = vmul.f32 %v2883_v11, %v2883_v11  ;;  %v1467_v1 = vpop.permute.xlu1 %1466 }
 0x754   :  { %v2047_v26 = vpop.eup %2046  ;;  %v1406_v35 = vadd.f32 1e-05, %v1402_v10  ;;  %v1495_v10 = vpop.permute.xlu2 %1494 }
 0x755   :  { %v1410_v38 = vmul.f32 %v2047_v26, %v1405_v18  ;;  %vm1416_vm2 = vweird.f32 %v2047_v26 }
 0x756   :  { %2048 = vrsqrt.f32 %v1406_v35  ;;  %vm1417_vm6 = vmor %vm1415_vm4, %vm1416_vm2  ;;  %vm1425_vm11 = vweird.f32 %v1406_v35 }
 0x757   :  { %v1411_v41 = vmul.f32 %v2047_v26, %v1410_v38  ;;  %v1387_v54 = vpop.f32.mrf.mxu1 }
 0x758   :  { %v1395_v19 = vmul.f32 0.015625, %v1387_v54 }
 0x759   :  { %v1412_v3 = vmul.f32 0.5, %v1411_v41 }
 0x75a   :  { %v1403_v46 = vsub.f32 %v1395_v19, %v1399_v48 }
 0x75b   :  { %v1413_v30 = vsub.f32 1.5, %v1412_v3 }
 0x75c   :  { %v2049_v44 = vpop.eup %2048  ;;  %v1407_v36 = vadd.f32 1e-05, %v1403_v46 }
 0x75d   :  { %v1414_v21 = vmul.f32 %v2047_v26, %v1413_v30  ;;  %v1420_v51 = vmul.f32 %v2049_v44, %v1406_v35  ;;  %vm1426_vm8 = vweird.f32 %v2049_v44 }
 0x75e   :  { %2050 = vrsqrt.f32 %v1407_v36  ;;  %vm1427_vm3 = vmor %vm1425_vm11, %vm1426_vm8  ;;  %vm1435_vm7 = vweird.f32 %v1407_v36 }
 0x75f   :  { %v1418_v61 = vsel %vm1417_vm6, %v2047_v26, %v1414_v21  ;;  %v1421_v45 = vmul.f32 %v2049_v44, %v1420_v51  ;;  %v1390_v52 = vpop.f32.mrf.mxu1 }
 0x760   :  { %v1469_v56 = vmul.f32 %v1452_v37, %v1418_v61  ;;  %v1396_v22 = vmul.f32 0.015625, %v1390_v52  ;;  %v1686_v52 = vpop.f32.mrf.mxu0 }
 0x761   :  { %v1422_v49 = vmul.f32 0.5, %v1421_v45 }
 0x762   :  { %v1473_v57 = vmul.f32 %v1469_v56, %v1360_v24  ;;  %v1404_v29 = vsub.f32 %v1396_v22, %v1400_v53  ;;  %1857 = vmatmul.msk.f32.vlgmr.msra.gmra.mxu2 %vm621_vm12, %v1469_v56 }
 0x763   :  { %v1423_v59 = vsub.f32 1.5, %v1422_v49 }
 0x764   :  { %v2051_v13 = vpop.eup %2050  ;;  %v1408_v0 = vadd.f32 1e-05, %v1404_v29  ;;  %v1497_v7 = vsub.f32 %v1480_v58, %v1473_v57 }
 0x765   :  { %v1430_v63 = vmul.f32 %v2051_v13, %v1407_v36  ;;  %v1424_v60 = vmul.f32 %v2049_v44, %v1423_v59  ;;  %vm1436_vm5 = vweird.f32 %v2051_v13 }
 0x766   :  { %2052 = vrsqrt.f32 %v1408_v0  ;;  %1862 = vmatmul.msk.f32.vlgmr.msra.gmra.mxu3 %vm621_vm12, %v1497_v7  ;;  %vm1437_vm9 = vmor %vm1435_vm7, %vm1436_vm5  ;;  %vm1445_vm14 = vweird.f32 %v1408_v0 }
 0x767   :  { %v1431_v9 = vmul.f32 %v2051_v13, %v1430_v63  ;;  %v1428_v39 = vsel %vm1427_vm3, %v2049_v44, %v1424_v60  ;;  %v1643_v63 = vpop.permute.xlu0 %1642 }
 0x768   :  { %v1470_v12 = vmul.f32 %v1457_v8, %v1428_v39  ;;  %v1687_v8 = vadd.f32 %v1686_v52, %v1643_v63 }
 0x769   :  { %v1432_v28 = vmul.f32 0.5, %v1431_v9 }
 0x76a   :  { %1858 = vmatmul.msk.f32.gmra.mxu2 %vm621_vm12, %v1470_v12  ;;  %v1474_v6 = vmul.f32 %v1470_v12, %v1361_v55  ;;  %v1688_v12 = vpop.f32.mrf.mxu0 }
 0x76b   :  { %v1433_v16 = vsub.f32 1.5, %v1432_v28 }
 0x76c   :  { %v2053_v32 = vpop.eup %2052  ;;  %v1498_v34 = vsub.f32 %v1485_v14, %v1474_v6 }
 0x76d   :  { %v1440_v33 = vmul.f32 %v2053_v32, %v1408_v0  ;;  %v1434_v15 = vmul.f32 %v2051_v13, %v1433_v16  ;;  %vm1446_vm13 = vweird.f32 %v2053_v32 }
 0x76e   :  { %1863 = vmatmul.msk.f32.gmra.mxu3 %vm621_vm12, %v1498_v34  ;;  %vm1447_vm15 = vmor %vm1445_vm14, %vm1446_vm13 }
 0x76f   :  { %v1441_v40 = vmul.f32 %v2053_v32, %v1440_v33  ;;  %v1438_v24 = vsel %vm1437_vm9, %v2051_v13, %v1434_v15  ;;  %v1648_v15 = vpop.permute.xlu1 %1647 }
 0x770   :  { %v1471_v62 = vmul.f32 %v1462_v20, %v1438_v24 }
 0x771   :  { %v1442_v4 = vmul.f32 0.5, %v1441_v40  ;;  %v1689_v40 = vadd.f32 %v1688_v12, %v1648_v15 }
 0x772   :  { %1859 = vmatmul.msk.f32.gmra.mxu2 %vm621_vm12, %v1471_v62  ;;  %v1475_v17 = vmul.f32 %v1471_v62, %v2883_v11 }
 0x773   :  { %v1443_v55 = vsub.f32 1.5, %v1442_v4 }
 0x774   :  { %v1499_v5 = vsub.f32 %v1490_v43, %v1475_v17  ;;  %v1691_v43 = vpop.f32.mrf.mxu0 }
 0x775   :  { %v1444_v18 = vmul.f32 %v2053_v32, %v1443_v55 }
 0x776   :  { %1864 = vmatmul.msk.f32.gmra.mxu3 %vm621_vm12, %v1499_v5 }
 0x777   :  { %v1448_v23 = vsel %vm1447_vm15, %v2053_v32, %v1444_v18 }
 0x778   :  { %v1472_v42 = vmul.f32 %v1467_v1, %v1448_v23  ;;  %v1653_v23 = vpop.permute.xlu2 %1652 }
 0x77a   :  { %1860 = vmatmul.msk.f32.gmra.mxu2 %vm621_vm12, %v1472_v42  ;;  %v1476_v31 = vmul.f32 %v1472_v42, %v2887_v25 }
 0x77c   :  { %v1500_v26 = vsub.f32 %v1495_v10, %v1476_v31  ;;  %v1692_v31 = vadd.f32 %v1691_v43, %v1653_v23 }
 0x77e   :  { %1865 = vmatmul.msk.f32.gmra.mxu3 %vm621_vm12, %v1500_v26 }
 0x7e5   :  { %v1530_v11 = vpop.f32.mrf.mxu2 }
 0x7e6   :  { %v1583_v35 = vmul.f32 %v1530_v11, %v2832_v47 }
 0x7e9   :  { %v1571_v38 = vpop.f32.mrf.mxu3 }
 0x7ea   :  { %v1587_v48 = vadd.f32 %v1583_v35, %v1571_v38  ;;  %v1693_v35 = vpop.f32.mrf.mxu0 }
 0x7ec   :  { %v1591_v41 = vmin.f32 %v1587_v48, 20.0 }
 0x7ed   :  { %v1533_v54 = vpop.f32.mrf.mxu2 }
 0x7ee   :  { %v1595_v19 = vmul.f32 1.442695, %v1591_v41  ;;  %v1584_v3 = vmul.f32 %v1533_v54, %v2839_v50  ;;  %v1658_v41 = vpop.permute.xlu0 %1657 }
 0x7ef   :  { %v1694_v54 = vadd.f32 %v1693_v35, %v1658_v41 }
 0x7f0   :  { %2054 = vpow2.f32 %v1595_v19 }
 0x7f1   :  { %v1574_v46 = vpop.f32.mrf.mxu3 }
 0x7f2   :  { %v1588_v30 = vadd.f32 %v1584_v3, %v1574_v46 }
 0x7f4   :  { %v1592_v44 = vmin.f32 %v1588_v30, 20.0 }
 0x7f5   :  { %v1536_v36 = vpop.f32.mrf.mxu2 }
 0x7f6   :  { %v2055_v25 = vpop.eup %2054  ;;  %v1597_v21 = vmul.f32 1.442695, %v1592_v44  ;;  %v1585_v37 = vmul.f32 %v1536_v36, %v2846_v2 }
 0x7f7   :  { %v1603_v51 = vadd.f32 1.0, %v2055_v25 }
 0x7f8   :  { %2056 = vpow2.f32 %v1597_v21 }
 0x7f9   :  { %v1607_v61 = vmul.f32 %v1603_v51, %v1603_v51  ;;  %v1577_v47 = vpop.f32.mrf.mxu3 }
 0x7fa   :  { %v1589_v45 = vadd.f32 %v1585_v37, %v1577_v47 }
 0x7fb   :  { %v1619_v53 = vadd.f32 1.0, %v1607_v61  ;;  %v1866_v50 = vadd.f32 -1.0, %v1607_v61 }
 0x7fc   :  { %v1593_v56 = vmin.f32 %v1589_v45, 20.0 }
 0x7fd   :  { %2058 = vrcp.f32 %v1619_v53  ;;  %v1539_v22 = vpop.f32.mrf.mxu2  ;;  %v1615_v0 = vmul.f32 %v1866_v50, %v1587_v48 }
 0x7fe   :  { %v2057_v49 = vpop.eup %2056  ;;  %v1599_v57 = vmul.f32 1.442695, %v1593_v56  ;;  %v1586_v58 = vmul.f32 %v1539_v22, %v2853_v27 }
 0x7ff   :  { %v1604_v29 = vadd.f32 1.0, %v2057_v49 }
 0x800   :  { %2060 = vpow2.f32 %v1599_v57 }
 0x801   :  { %v1608_v59 = vmul.f32 %v1604_v29, %v1604_v29  ;;  %v1580_v13 = vpop.f32.mrf.mxu3 }
 0x802   :  { %v1590_v7 = vadd.f32 %v1586_v58, %v1580_v13 }
 0x803   :  { %v2059_v2 = vpop.eup %2058  ;;  %v1620_v60 = vadd.f32 1.0, %v1608_v59  ;;  %v1867_v14 = vadd.f32 -1.0, %v1608_v59 }
 0x804   :  { %v1627_v9 = vmul.f32 %v2059_v2, %v1615_v0  ;;  %v1594_v39 = vmin.f32 %v1590_v7, 20.0 }
 0x805   :  { %2062 = vrcp.f32 %v1620_v60  ;;  %v1616_v34 = vmul.f32 %v1867_v14, %v1588_v30 }
 0x806   :  { %v2061_v28 = vpop.eup %2060  ;;  %v1696_v6 = vadd.f32 %v1687_v8, %v1627_v9  ;;  %v1601_v16 = vmul.f32 1.442695, %v1594_v39 }
 0x807   :  { %v1605_v32 = vadd.f32 1.0, %v2061_v28 }
 0x808   :  { %1700 = vst.msk [vmem:[%s2940_s19] sm:$0xff] %vm352_vm10, %v1696_v6  ;;  %2064 = vpow2.f32 %v1601_v16 }
 0x809   :  { %v1609_v27 = vmul.f32 %v1605_v32, %v1605_v32 }
 0x80b   :  { %v2063_v33 = vpop.eup %2062  ;;  %v1621_v20 = vadd.f32 1.0, %v1609_v27  ;;  %v1868_v17 = vadd.f32 -1.0, %v1609_v27 }
 0x80c   :  { %v1628_v24 = vmul.f32 %v2063_v33, %v1616_v34 }
 0x80d   :  { %2066 = vrcp.f32 %v1621_v20  ;;  %v1617_v18 = vmul.f32 %v1868_v17, %v1589_v45 }
 0x80e   :  { %v2065_v62 = vpop.eup %2064  ;;  %v1697_v4 = vadd.f32 %v1689_v40, %v1628_v24 }
 0x80f   :  { %v1606_v55 = vadd.f32 1.0, %v2065_v62 }
 0x810   :  { %1701 = vst.msk [vmem:[%s2940_s19 + $0x8] sm:$0xff] %vm352_vm10, %v1697_v4 }
 0x811   :  { %v1610_v5 = vmul.f32 %v1606_v55, %v1606_v55 }
 0x813   :  { %v2067_v1 = vpop.eup %2066  ;;  %v1622_v42 = vadd.f32 1.0, %v1610_v5  ;;  %v1869_v11 = vadd.f32 -1.0, %v1610_v5 }
 0x814   :  { %v1629_v10 = vmul.f32 %v2067_v1, %v1617_v18 }
 0x815   :  { %2068 = vrcp.f32 %v1622_v42  ;;  %v1618_v38 = vmul.f32 %v1869_v11, %v1590_v7 }
 0x816   :  { %v1698_v26 = vadd.f32 %v1692_v31, %v1629_v10 }
 0x818   :  { %1702 = vst.msk [vmem:[%s2940_s19 + $0x10] sm:$0xff] %vm352_vm10, %v1698_v26 }
 0x81b   :  { %v2069_v48 = vpop.eup %2068 }
 0x81c   :  { %v1630_v19 = vmul.f32 %v2069_v48, %v1618_v38 }
 0x81e   :  { %v1699_v3 = vadd.f32 %v1694_v54, %v1630_v19 }
 0x820   :  { %1703 = vst.msk [vmem:[%s2940_s19 + $0x18] sm:$0xff] %vm352_vm10, %v1699_v3 }
 0x821   :  { %1708 = vsyncpa [#allocation3], 1 }
 0x822   :  { %1709 = vsyncpa [#allocation5], 1 }
 0x823   :  { %1710 = vsyncpa [#allocation8], 1 }
 0x824   :  { %1711 = vsyncpa [#allocation11], 1 }

</bundles_post_ra>
